<compile_context>
chip_gen: v7x
topology: tpu7x:2x2x1
jax: 0.10.0
libtpu: 0.0.40
codegen_flags: <defaults>
</compile_context>

<pallas_src>
import functools
import math

import jax
import jax.numpy as jnp
from jax import lax
from jax.experimental import pallas as pl
from jax.experimental.pallas import tpu as pltpu

PAD, SOS, EOS = 0, 1, 2          # vocab.word2idx['<PAD>'/'<SOS>'/'<EOS>']
_WDT = jnp.bfloat16              # weight / MXU-operand dtype; activations stay f32


def _const_spec(shape):
    """Whole-array block with constant index_map -> VMEM-resident across the grid."""
    nd = len(shape)
    return pl.BlockSpec(shape, lambda b, t, _nd=nd: (0,) * _nd)


def _nbytes(shape, dtype):
    return math.prod(shape) * jnp.dtype(dtype).itemsize


def _vmem_limit(block_bytes, scratch_bytes):
    # double-buffer everything + headroom, capped at the smallest physical VMEM (v7x)
    return int(min(2 * block_bytes + scratch_bytes + (8 << 20), 64 << 20))


# -----------------------------------------------------------------------------
# Fused decoder kernel: T greedy decode steps per batch block, grid = (nb, T).
# -----------------------------------------------------------------------------
def _decoder_kernel(feats_ref, embed_ref, wah_ref, wxe_ref, wxc_ref, whd_ref,
                    bih_ref, bhh_ref, wout_ref, bout_ref,
                    out_ref, hid_ref, mp_ref,
                    h_scr, emb_scr, acch_scr, accl_scr):
    t = pl.program_id(1)
    T = pl.num_programs(1)
    Bt, H = h_scr.shape
    V = wout_ref.shape[1]

    @pl.when(t == 0)
    def _init():
        # outputs[0] / hidden_states[0] stay zero, exactly like the torch loop.
        out_ref[...] = jnp.zeros_like(out_ref)
        hid_ref[...] = jnp.zeros_like(hid_ref)
        h_scr[...] = jnp.zeros_like(h_scr)           # get_rnn_init_hidden (GRU -> zeros)
        acch_scr[...] = jnp.zeros_like(acch_scr)
        accl_scr[...] = jnp.zeros_like(accl_scr)
        # first decoder input is <SOS>: one-hot (bf16) @ VMEM-resident embedding
        iota_v = lax.broadcasted_iota(jnp.int32, (Bt, V), 1)
        emb_scr[...] = jnp.dot((iota_v == SOS).astype(_WDT), embed_ref[...],
                               preferred_element_type=jnp.float32)

    @pl.when(t > 0)
    def _step():
        h = h_scr[...]                               # (Bt, H)  f32
        emb = emb_scr[...]                           # (Bt, H)  f32
        feats = feats_ref[...]                       # (Bt, L, F) f32

        # --- dot-product attention (VPU mult + reduce; exact softmax) --------
        q = jnp.dot(h.astype(_WDT), wah_ref[...],
                    preferred_element_type=jnp.float32)                   # (Bt, F)
        s = jnp.sum(q[:, None, :] * feats, axis=-1)                       # (Bt, L)
        s = s - jnp.max(s, axis=-1, keepdims=True)
        e = jnp.exp(s)
        a = e / jnp.sum(e, axis=-1, keepdims=True)
        context = jnp.sum(a[:, :, None] * feats, axis=1)                  # (Bt, F)

        # --- GRU cell (torch.nn.GRUCell), x = [emb ; context] split weights ---
        gi = (jnp.dot(emb.astype(_WDT), wxe_ref[...],
                      preferred_element_type=jnp.float32)
              + jnp.dot(context.astype(_WDT), wxc_ref[...],
                        preferred_element_type=jnp.float32)
              + bih_ref[...])
        gh = jnp.dot(h.astype(_WDT), whd_ref[...],
                     preferred_element_type=jnp.float32) + bhh_ref[...]
        r = jax.nn.sigmoid(gi[:, :H] + gh[:, :H])
        z = jax.nn.sigmoid(gi[:, H:2 * H] + gh[:, H:2 * H])
        n = jnp.tanh(gi[:, 2 * H:] + r * gh[:, 2 * H:])
        h_new = (1.0 - z) * n + z * h                                     # (Bt, H)

        logits = (jnp.dot(h_new.astype(_WDT), wout_ref[...],
                          preferred_element_type=jnp.float32) + bout_ref[...])

        out_ref[...] = logits[None]                  # time-major (1, Bt, V) slab
        hid_ref[...] = h_new[None]                   # (1, Bt, H)
        h_scr[...] = h_new

        # --- greedy argmax in f32 (first maximal index = torch tie-break) ----
        iota_v = lax.broadcasted_iota(jnp.int32, (Bt, V), 1)
        mx = jnp.max(logits, axis=-1, keepdims=True)
        tok = jnp.min(jnp.where(logits == mx, iota_v, jnp.int32(V)),
                      axis=-1, keepdims=True)        # (Bt, 1) int32
        # next-step embedding (one-hot bf16 @ embed); see TODO(synk) above for
        # the HBM DMA-gather variant at realistic vocab sizes.
        emb_scr[...] = jnp.dot((iota_v == tok).astype(_WDT), embed_ref[...],
                               preferred_element_type=jnp.float32)

        # --- caption mask + masked mean-pool accumulation (fused mean_pool) --
        mask = jnp.logical_and(tok != PAD, tok != EOS).astype(jnp.float32)
        acch_scr[...] = acch_scr[...] + h_new * mask
        accl_scr[...] = accl_scr[...] + mask

    @pl.when(t == T - 1)
    def _fin():
        # matches torch mean_pool_hiddens: no epsilon (len == 0 -> NaN, like torch)
        mp_ref[...] = acch_scr[...] / accl_scr[...]


def _build_decoder(nb, T, Bt, L, F, H, V):
    in_specs = [
        pl.BlockSpec((Bt, L, F), lambda b, t: (b, 0, 0)),   # feats (batch-blocked)
        _const_spec((V, H)),              # embedding table (bf16)
        _const_spec((H, F)),              # W_ah  (attention query proj)
        _const_spec((H, 3 * H)),          # W_xe
        _const_spec((F, 3 * H)),          # W_xc
        _const_spec((H, 3 * H)),          # W_hd
        _const_spec((1, 3 * H)),          # b_ih
        _const_spec((1, 3 * H)),          # b_hh
        _const_spec((H, V)),              # W_out
        _const_spec((1, V)),              # b_out
    ]
    out_specs = [
        pl.BlockSpec((1, Bt, V), lambda b, t: (t, b, 0)),   # outputs (T, B, V)
        pl.BlockSpec((1, Bt, H), lambda b, t: (t, b, 0)),   # decoder hiddens (T, B, H)
        pl.BlockSpec((Bt, H), lambda b, t: (b, 0)),         # mean-pooled hidden (B, H)
    ]
    scratch_shapes = [
        pltpu.VMEM((Bt, H), jnp.float32),   # carried hidden state
        pltpu.VMEM((Bt, H), jnp.float32),   # next-step input embedding
        pltpu.VMEM((Bt, H), jnp.float32),   # masked hidden accumulator
        pltpu.VMEM((Bt, 1), jnp.float32),   # caption-length accumulator
    ]
    blk = (_nbytes((Bt, L, F), jnp.float32) + _nbytes((V, H), _WDT)
           + _nbytes((H, F), _WDT) + 2 * _nbytes((H, 3 * H), _WDT)
           + _nbytes((F, 3 * H), _WDT) + 2 * _nbytes((1, 3 * H), jnp.float32)
           + _nbytes((H, V), _WDT) + _nbytes((1, V), jnp.float32)
           + _nbytes((1, Bt, V), jnp.float32) + _nbytes((1, Bt, H), jnp.float32)
           + _nbytes((Bt, H), jnp.float32))
    scr = 3 * _nbytes((Bt, H), jnp.float32) + _nbytes((Bt, 1), jnp.float32)
    return pl.pallas_call(
        _decoder_kernel,
        out_shape=(jax.ShapeDtypeStruct((T, nb * Bt, V), jnp.float32),
                   jax.ShapeDtypeStruct((T, nb * Bt, H), jnp.float32),
                   jax.ShapeDtypeStruct((nb * Bt, H), jnp.float32)),
        grid_spec=pltpu.PrefetchScalarGridSpec(
            num_scalar_prefetch=0, grid=(nb, T),
            in_specs=in_specs, out_specs=out_specs, scratch_shapes=scratch_shapes),
        compiler_params=pltpu.CompilerParams(
            dimension_semantics=("parallel", "arbitrary"),
            vmem_limit_bytes=_vmem_limit(blk, scr)),
    )


# -----------------------------------------------------------------------------
# Fused global-reconstructor kernel: grid = (nb, T).  Input-side matmuls are
# hoisted to XLA; the kernel just streams (1, Bt, 3Hr) slabs and runs the gates.
# -----------------------------------------------------------------------------
def _recon_kernel(giall_ref, gimp_ref, whr_ref, bhh_ref, out_ref, hr_scr):
    t = pl.program_id(1)
    Bt, Hr = hr_scr.shape

    @pl.when(t == 0)
    def _init():
        hr_scr[...] = jnp.zeros_like(hr_scr)         # get_rnn_init_hidden (GRU)

    hr = hr_scr[...]                                 # (Bt, Hr)
    gi = giall_ref[0] + gimp_ref[...]                # (Bt, 3Hr): dh@W_xd + mp@W_xm + b_ih
    gh = jnp.dot(hr.astype(_WDT), whr_ref[...],
                 preferred_element_type=jnp.float32) + bhh_ref[...]
    r = jax.nn.sigmoid(gi[:, :Hr] + gh[:, :Hr])
    z = jax.nn.sigmoid(gi[:, Hr:2 * Hr] + gh[:, Hr:2 * Hr])
    n = jnp.tanh(gi[:, 2 * Hr:] + r * gh[:, 2 * Hr:])
    hr_new = (1.0 - z) * n + z * hr
    hr_scr[...] = hr_new
    out_ref[...] = hr_new[None]                      # (1, Bt, Hr) time-major slab


def _build_recon(nb, T, Bt, Hr):
    in_specs = [
        pl.BlockSpec((1, Bt, 3 * Hr), lambda b, t: (t, b, 0)),  # dh @ W_xd  (streamed)
        pl.BlockSpec((Bt, 3 * Hr), lambda b, t: (b, 0)),        # mp @ W_xm + b_ih
        _const_spec((Hr, 3 * Hr)),                              # W_hr (bf16)
        _const_spec((1, 3 * Hr)),                               # b_hh
    ]
    out_specs = pl.BlockSpec((1, Bt, Hr), lambda b, t: (t, b, 0))
    blk = (_nbytes((1, Bt, 3 * Hr), jnp.float32) + _nbytes((Bt, 3 * Hr), jnp.float32)
           + _nbytes((Hr, 3 * Hr), _WDT) + _nbytes((1, 3 * Hr), jnp.float32)
           + _nbytes((1, Bt, Hr), jnp.float32))
    scr = _nbytes((Bt, Hr), jnp.float32)
    return pl.pallas_call(
        _recon_kernel,
        out_shape=jax.ShapeDtypeStruct((T, nb * Bt, Hr), jnp.float32),
        grid_spec=pltpu.PrefetchScalarGridSpec(
            num_scalar_prefetch=0, grid=(nb, T),
            in_specs=in_specs, out_specs=out_specs,
            scratch_shapes=[pltpu.VMEM((Bt, Hr), jnp.float32)]),
        compiler_params=pltpu.CompilerParams(
            dimension_semantics=("parallel", "arbitrary"),
            vmem_limit_bytes=_vmem_limit(blk, scr)),
    )


# -----------------------------------------------------------------------------
# Parameter init (deterministic synthetic weights; bf16 weights, f32 biases).
# -----------------------------------------------------------------------------
def init_params(key, V, H, F, Hr):
    ks = jax.random.split(key, 9)
    s = 0.1

    def w(k, shape):
        return (jax.random.normal(k, shape, jnp.float32) * s).astype(_WDT)

    return {
        'embed': w(ks[0], (V, H)),
        'W_ah':  w(ks[1], (H, F)),              # attention query projection
        'W_xe':  w(ks[2], (H, 3 * H)),          # GRU input weights (embedding part)
        'W_xc':  w(ks[3], (F, 3 * H)),          # GRU input weights (context part)
        'W_hd':  w(ks[4], (H, 3 * H)),          # GRU hidden weights
        'b_d':   jnp.zeros((1, 3 * H), jnp.float32),   # b_ih
        'b_hd':  jnp.zeros((1, 3 * H), jnp.float32),   # b_hh
        'W_out': w(ks[5], (H, V)),              # vocab projection
        'b_out': jnp.zeros((1, V), jnp.float32),
        'W_xd':  w(ks[6], (H, 3 * Hr)),         # reconstructor (decoder hidden)
        'W_xm':  w(ks[7], (H, 3 * Hr)),         # reconstructor (mean pooled)
        'W_hr':  w(ks[8], (Hr, 3 * Hr)),        # reconstructor hidden
        'b_r':   jnp.zeros((1, 3 * Hr), jnp.float32),  # b_ih
        'b_hr':  jnp.zeros((1, 3 * Hr), jnp.float32),  # b_hh
    }


# -----------------------------------------------------------------------------
# CaptionGenerator.forward (captions=None, teacher_forcing_ratio=0.0).
# -----------------------------------------------------------------------------
@functools.partial(jax.jit, static_argnums=(2,))
def caption_generator_forward(params, feats, max_caption_len):
    B, L, F = feats.shape
    H = params['W_hd'].shape[0]
    V = params['W_out'].shape[1]
    Hr = params['W_hr'].shape[0]
    T = max_caption_len + 2

    Bt = 8 if B % 8 == 0 else B          # batch block (sublane-dense, megacore split)
    nb = B // Bt

    # ---- forward_decoder: one fused kernel over all T steps -----------------
    dec = _build_decoder(nb, T, Bt, L, F, H, V)
    outputs, dec_hiddens, mean_pooled = dec(
        feats, params['embed'], params['W_ah'], params['W_xe'], params['W_xc'],
        params['W_hd'], params['b_d'], params['b_hd'],
        params['W_out'], params['b_out'])

    # ---- reconstructor input-side matmuls hoisted to XLA (one big matmul) ----
    gi_all = jnp.einsum('tbh,hk->tbk', dec_hiddens.astype(_WDT), params['W_xd'],
                        preferred_element_type=jnp.float32)            # (T, B, 3Hr)
    gi_mp = (jnp.dot(mean_pooled.astype(_WDT), params['W_xm'],
                     preferred_element_type=jnp.float32) + params['b_r'])  # (B, 3Hr)

    # ---- forward_global_reconstructor: one fused kernel over all T steps ----
    rec = _build_recon(nb, T, Bt, Hr)
    recon_tm = rec(gi_all, gi_mp, params['W_hr'], params['b_hr'])      # (T, B, Hr)
    feats_recon = jnp.transpose(recon_tm, (1, 0, 2))                   # (B, T, Hr)

    return outputs, feats_recon


if __name__ == "__main__":
    key = jax.random.PRNGKey(0)
    # Small but lane/sublane-dense shapes (feedback: keep lane dims multiples of 128).
    B, L, F = 16, 8, 128        # batch, feat_len, feat_size
    H, Hr, V = 128, 128, 256    # decoder hidden, reconstructor hidden, vocab size
    max_caption_len = 6         # -> T = 8 decoding steps

    kp, kf = jax.random.split(key)
    params = init_params(kp, V, H, F, Hr)
    feats = jax.random.normal(kf, (B, L, F), jnp.float32)

    outputs, feats_recon = caption_generator_forward(params, feats, max_caption_len)
    jax.block_until_ready((outputs, feats_recon))

    assert outputs.shape == (max_caption_len + 2, B, V)
    assert feats_recon.shape == (B, max_caption_len + 2, Hr)
    assert bool(jnp.all(jnp.isfinite(outputs)))
    print("KERNEL_OK")
</pallas_src>

<mosaic_0001>
module attributes {stable_mosaic.version = 11 : i64} {
  func.func @_decoder_kernel(%arg0: i32, %arg1: i32, %arg2: memref<8x8x128xf32, #tpu.memory_space<vmem>>, %arg3: memref<256x128xbf16, #tpu.memory_space<vmem>>, %arg4: memref<128x128xbf16, #tpu.memory_space<vmem>>, %arg5: memref<128x384xbf16, #tpu.memory_space<vmem>>, %arg6: memref<128x384xbf16, #tpu.memory_space<vmem>>, %arg7: memref<128x384xbf16, #tpu.memory_space<vmem>>, %arg8: memref<1x384xf32, #tpu.memory_space<vmem>>, %arg9: memref<1x384xf32, #tpu.memory_space<vmem>>, %arg10: memref<128x256xbf16, #tpu.memory_space<vmem>>, %arg11: memref<1x256xf32, #tpu.memory_space<vmem>>, %arg12: memref<1x8x256xf32, #tpu.memory_space<vmem>>, %arg13: memref<1x8x128xf32, #tpu.memory_space<vmem>>, %arg14: memref<8x128xf32, #tpu.memory_space<vmem>>, %arg15: memref<8x128xf32, #tpu.memory_space<vmem>>, %arg16: memref<8x128xf32, #tpu.memory_space<vmem>>, %arg17: memref<8x128xf32, #tpu.memory_space<vmem>>, %arg18: memref<8x1xf32, #tpu.memory_space<vmem>>) attributes {dimension_semantics = [#tpu.dimension_semantics<parallel>, #tpu.dimension_semantics<arbitrary>], iteration_bounds = array<i64: 2, 8>, scalar_prefetch = 0 : i64, scratch_operands = 4 : i64, tpu.core_type = #tpu.core_type<tc>, window_params = [{transform_indices = @transform_0, window_bounds = array<i64: 8, 8, 128>}, {pipeline_mode = #tpu.pipeline_mode<synchronous>, transform_indices = @transform_1, window_bounds = array<i64: 256, 128>}, {pipeline_mode = #tpu.pipeline_mode<synchronous>, transform_indices = @transform_2, window_bounds = array<i64: 128, 128>}, {pipeline_mode = #tpu.pipeline_mode<synchronous>, transform_indices = @transform_3, window_bounds = array<i64: 128, 384>}, {pipeline_mode = #tpu.pipeline_mode<synchronous>, transform_indices = @transform_4, window_bounds = array<i64: 128, 384>}, {pipeline_mode = #tpu.pipeline_mode<synchronous>, transform_indices = @transform_5, window_bounds = array<i64: 128, 384>}, {pipeline_mode = #tpu.pipeline_mode<synchronous>, transform_indices = @transform_6, window_bounds = array<i64: 1, 384>}, {pipeline_mode = #tpu.pipeline_mode<synchronous>, transform_indices = @transform_7, window_bounds = array<i64: 1, 384>}, {pipeline_mode = #tpu.pipeline_mode<synchronous>, transform_indices = @transform_8, window_bounds = array<i64: 128, 256>}, {pipeline_mode = #tpu.pipeline_mode<synchronous>, transform_indices = @transform_9, window_bounds = array<i64: 1, 256>}, {transform_indices = @transform_10, window_bounds = array<i64: 1, 8, 256>}, {transform_indices = @transform_11, window_bounds = array<i64: 1, 8, 128>}, {transform_indices = @transform_12, window_bounds = array<i64: 8, 128>}]} {
    %c0_i32 = arith.constant 0 : i32
    %0 = arith.cmpi eq, %arg1, %c0_i32 : i32
    %1 = arith.extui %0 : i1 to i32
    %c0_i32_0 = arith.constant 0 : i32
    %2 = arith.cmpi ne, %1, %c0_i32_0 : i32
    scf.if %2 {
      %cst = arith.constant 0.000000e+00 : f32
      %9 = vector.broadcast %cst : f32 to vector<1x8x256xf32>
      %c0 = arith.constant 0 : index
      %c0_4 = arith.constant 0 : index
      %c0_5 = arith.constant 0 : index
      %10 = vector.load %arg12[%c0, %c0_4, %c0_5] : memref<1x8x256xf32, #tpu.memory_space<vmem>>, vector<1x8x256xf32>
      tpu.vector_store %arg12[%c0, %c0_4, %c0_5], %9 {strides = array<i32>} : memref<1x8x256xf32, #tpu.memory_space<vmem>>, vector<1x8x256xf32>,
      %cst_6 = arith.constant 0.000000e+00 : f32
      %11 = vector.broadcast %cst_6 : f32 to vector<1x8x128xf32>
      %c0_7 = arith.constant 0 : index
      %c0_8 = arith.constant 0 : index
      %c0_9 = arith.constant 0 : index
      %12 = vector.load %arg13[%c0_7, %c0_8, %c0_9] : memref<1x8x128xf32, #tpu.memory_space<vmem>>, vector<1x8x128xf32>
      tpu.vector_store %arg13[%c0_7, %c0_8, %c0_9], %11 {strides = array<i32>} : memref<1x8x128xf32, #tpu.memory_space<vmem>>, vector<1x8x128xf32>,
      %cst_10 = arith.constant 0.000000e+00 : f32
      %13 = vector.broadcast %cst_10 : f32 to vector<8x128xf32>
      %c0_11 = arith.constant 0 : index
      %c0_12 = arith.constant 0 : index
      %14 = vector.load %arg15[%c0_11, %c0_12] : memref<8x128xf32, #tpu.memory_space<vmem>>, vector<8x128xf32>
      tpu.vector_store %arg15[%c0_11, %c0_12], %13 {strides = array<i32>} : memref<8x128xf32, #tpu.memory_space<vmem>>, vector<8x128xf32>,
      %cst_13 = arith.constant 0.000000e+00 : f32
      %15 = vector.broadcast %cst_13 : f32 to vector<8x128xf32>
      %c0_14 = arith.constant 0 : index
      %c0_15 = arith.constant 0 : index
      %16 = vector.load %arg17[%c0_14, %c0_15] : memref<8x128xf32, #tpu.memory_space<vmem>>, vector<8x128xf32>
      tpu.vector_store %arg17[%c0_14, %c0_15], %15 {strides = array<i32>} : memref<8x128xf32, #tpu.memory_space<vmem>>, vector<8x128xf32>,
      %cst_16 = arith.constant 0.000000e+00 : f32
      %17 = vector.broadcast %cst_16 : f32 to vector<8x1xf32>
      %c0_17 = arith.constant 0 : index
      %c0_18 = arith.constant 0 : index
      %18 = vector.load %arg18[%c0_17, %c0_18] : memref<8x1xf32, #tpu.memory_space<vmem>>, vector<8x1xf32>
      tpu.vector_store %arg18[%c0_17, %c0_18], %17 {strides = array<i32>} : memref<8x1xf32, #tpu.memory_space<vmem>>, vector<8x1xf32>,
      %19 = tpu.iota {dimensions = array<i32: 1>} : vector<8x256xi32>
      %c1_i32 = arith.constant 1 : i32
      %20 = vector.broadcast %c1_i32 : i32 to vector<8x256xi32>
      %21 = arith.cmpi eq, %19, %20 : vector<8x256xi32>
      %22 = arith.extui %21 : vector<8x256xi1> to vector<8x256xi32>
      %23 = arith.sitofp %22 : vector<8x256xi32> to vector<8x256xf32>
      %24 = arith.truncf %23 : vector<8x256xf32> to vector<8x256xbf16>
      %c0_19 = arith.constant 0 : index
      %c0_20 = arith.constant 0 : index
      %25 = vector.load %arg3[%c0_19, %c0_20] : memref<256x128xbf16, #tpu.memory_space<vmem>>, vector<256x128xbf16>
      %cst_21 = arith.constant dense<0.000000e+00> : vector<8x128xf32>
      %26 = tpu.matmul %24, %25, %cst_21 {dimension_numbers = #tpu.dot_dimension_numbers<[1], [0], [0], [1], [0, 0, 1, 1], [], []>} : vector<8x256xbf16>, vector<256x128xbf16>, vector<8x128xf32> -> vector<8x128xf32>
      %c0_22 = arith.constant 0 : index
      %c0_23 = arith.constant 0 : index
      %27 = vector.load %arg16[%c0_22, %c0_23] : memref<8x128xf32, #tpu.memory_space<vmem>>, vector<8x128xf32>
      tpu.vector_store %arg16[%c0_22, %c0_23], %26 {strides = array<i32>} : memref<8x128xf32, #tpu.memory_space<vmem>>, vector<8x128xf32>,
    } else {
    }
    %c0_i32_1 = arith.constant 0 : i32
    %3 = arith.cmpi sgt, %arg1, %c0_i32_1 : i32
    %4 = arith.extui %3 : i1 to i32
    %c0_i32_2 = arith.constant 0 : i32
    %5 = arith.cmpi ne, %4, %c0_i32_2 : i32
    scf.if %5 {
      %c0 = arith.constant 0 : index
      %c0_4 = arith.constant 0 : index
      %9 = vector.load %arg15[%c0, %c0_4] : memref<8x128xf32, #tpu.memory_space<vmem>>, vector<8x128xf32>
      %c0_5 = arith.constant 0 : index
      %c0_6 = arith.constant 0 : index
      %10 = vector.load %arg16[%c0_5, %c0_6] : memref<8x128xf32, #tpu.memory_space<vmem>>, vector<8x128xf32>
      %c0_7 = arith.constant 0 : index
      %c0_8 = arith.constant 0 : index
      %c0_9 = arith.constant 0 : index
      %11 = vector.load %arg2[%c0_7, %c0_8, %c0_9] : memref<8x8x128xf32, #tpu.memory_space<vmem>>, vector<8x8x128xf32>
      %12 = arith.truncf %9 : vector<8x128xf32> to vector<8x128xbf16>
      %c0_10 = arith.constant 0 : index
      %c0_11 = arith.constant 0 : index
      %13 = vector.load %arg4[%c0_10, %c0_11] : memref<128x128xbf16, #tpu.memory_space<vmem>>, vector<128x128xbf16>
      %cst = arith.constant dense<0.000000e+00> : vector<8x128xf32>
      %14 = tpu.matmul %12, %13, %cst {dimension_numbers = #tpu.dot_dimension_numbers<[1], [0], [0], [1], [0, 0, 1, 1], [], []>} : vector<8x128xbf16>, vector<128x128xbf16>, vector<8x128xf32> -> vector<8x128xf32>
      %15 = vector.shape_cast %14 : vector<8x128xf32> to vector<8x1x128xf32>
      %16 = vector.broadcast %15 : vector<8x1x128xf32> to vector<8x8x128xf32>
      %17 = arith.mulf %16, %11 : vector<8x8x128xf32>
      %cst_12 = arith.constant dense<0.000000e+00> : vector<8x8xf32>
      %18 = vector.multi_reduction <add>, %17, %cst_12 [2] : vector<8x8x128xf32> to vector<8x8xf32>
      %cst_13 = arith.constant dense<0xFF800000> : vector<8xf32>
      %19 = vector.multi_reduction <maximumf>, %18, %cst_13 [1] : vector<8x8xf32> to vector<8xf32>
      %20 = vector.shape_cast %19 : vector<8xf32> to vector<8x1xf32>
      %21 = vector.broadcast %20 : vector<8x1xf32> to vector<8x8xf32>
      %22 = arith.subf %18, %21 : vector<8x8xf32>
      %23 = math.exp %22 : vector<8x8xf32>
      %cst_14 = arith.constant dense<0.000000e+00> : vector<8xf32>
      %24 = vector.multi_reduction <add>, %23, %cst_14 [1] : vector<8x8xf32> to vector<8xf32>
      %25 = vector.shape_cast %24 : vector<8xf32> to vector<8x1xf32>
      %26 = vector.broadcast %25 : vector<8x1xf32> to vector<8x8xf32>
      %27 = arith.divf %23, %26 : vector<8x8xf32>
      %28 = vector.shape_cast %27 : vector<8x8xf32> to vector<8x8x1xf32>
      %29 = vector.broadcast %28 : vector<8x8x1xf32> to vector<8x8x128xf32>
      %30 = arith.mulf %29, %11 : vector<8x8x128xf32>
      %cst_15 = arith.constant dense<0.000000e+00> : vector<8x128xf32>
      %31 = vector.multi_reduction <add>, %30, %cst_15 [1] : vector<8x8x128xf32> to vector<8x128xf32>
      %32 = arith.truncf %10 : vector<8x128xf32> to vector<8x128xbf16>
      %c0_16 = arith.constant 0 : index
      %c0_17 = arith.constant 0 : index
      %33 = vector.load %arg5[%c0_16, %c0_17] : memref<128x384xbf16, #tpu.memory_space<vmem>>, vector<128x384xbf16>
      %cst_18 = arith.constant dense<0.000000e+00> : vector<8x384xf32>
      %34 = tpu.matmul %32, %33, %cst_18 {dimension_numbers = #tpu.dot_dimension_numbers<[1], [0], [0], [1], [0, 0, 1, 1], [], []>} : vector<8x128xbf16>, vector<128x384xbf16>, vector<8x384xf32> -> vector<8x384xf32>
      %35 = arith.truncf %31 : vector<8x128xf32> to vector<8x128xbf16>
      %c0_19 = arith.constant 0 : index
      %c0_20 = arith.constant 0 : index
      %36 = vector.load %arg6[%c0_19, %c0_20] : memref<128x384xbf16, #tpu.memory_space<vmem>>, vector<128x384xbf16>
      %cst_21 = arith.constant dense<0.000000e+00> : vector<8x384xf32>
      %37 = tpu.matmul %35, %36, %cst_21 {dimension_numbers = #tpu.dot_dimension_numbers<[1], [0], [0], [1], [0, 0, 1, 1], [], []>} : vector<8x128xbf16>, vector<128x384xbf16>, vector<8x384xf32> -> vector<8x384xf32>
      %38 = arith.addf %34, %37 : vector<8x384xf32>
      %c0_22 = arith.constant 0 : index
      %c0_23 = arith.constant 0 : index
      %39 = vector.load %arg8[%c0_22, %c0_23] : memref<1x384xf32, #tpu.memory_space<vmem>>, vector<1x384xf32>
      %40 = vector.broadcast %39 : vector<1x384xf32> to vector<8x384xf32>
      %41 = arith.addf %38, %40 : vector<8x384xf32>
      %42 = arith.truncf %9 : vector<8x128xf32> to vector<8x128xbf16>
      %c0_24 = arith.constant 0 : index
      %c0_25 = arith.constant 0 : index
      %43 = vector.load %arg7[%c0_24, %c0_25] : memref<128x384xbf16, #tpu.memory_space<vmem>>, vector<128x384xbf16>
      %cst_26 = arith.constant dense<0.000000e+00> : vector<8x384xf32>
      %44 = tpu.matmul %42, %43, %cst_26 {dimension_numbers = #tpu.dot_dimension_numbers<[1], [0], [0], [1], [0, 0, 1, 1], [], []>} : vector<8x128xbf16>, vector<128x384xbf16>, vector<8x384xf32> -> vector<8x384xf32>
      %c0_27 = arith.constant 0 : index
      %c0_28 = arith.constant 0 : index
      %45 = vector.load %arg9[%c0_27, %c0_28] : memref<1x384xf32, #tpu.memory_space<vmem>>, vector<1x384xf32>
      %46 = vector.broadcast %45 : vector<1x384xf32> to vector<8x384xf32>
      %47 = arith.addf %44, %46 : vector<8x384xf32>
      %48 = vector.extract_strided_slice %41 {offsets = [0, 0], sizes = [8, 128], strides = [1, 1]} : vector<8x384xf32> to vector<8x128xf32>
      %49 = vector.extract_strided_slice %47 {offsets = [0, 0], sizes = [8, 128], strides = [1, 1]} : vector<8x384xf32> to vector<8x128xf32>
      %50 = arith.addf %48, %49 : vector<8x128xf32>
      %51 = arith.negf %50 : vector<8x128xf32>
      %52 = math.exp %51 : vector<8x128xf32>
      %cst_29 = arith.constant 1.000000e+00 : f32
      %53 = vector.broadcast %cst_29 : f32 to vector<8x128xf32>
      %54 = arith.addf %53, %52 : vector<8x128xf32>
      %55 = arith.divf %53, %54 : vector<8x128xf32>
      %56 = vector.extract_strided_slice %41 {offsets = [0, 128], sizes = [8, 128], strides = [1, 1]} : vector<8x384xf32> to vector<8x128xf32>
      %57 = vector.extract_strided_slice %47 {offsets = [0, 128], sizes = [8, 128], strides = [1, 1]} : vector<8x384xf32> to vector<8x128xf32>
      %58 = arith.addf %56, %57 : vector<8x128xf32>
      %59 = arith.negf %58 : vector<8x128xf32>
      %60 = math.exp %59 : vector<8x128xf32>
      %cst_30 = arith.constant 1.000000e+00 : f32
      %61 = vector.broadcast %cst_30 : f32 to vector<8x128xf32>
      %62 = arith.addf %61, %60 : vector<8x128xf32>
      %63 = arith.divf %61, %62 : vector<8x128xf32>
      %64 = vector.extract_strided_slice %41 {offsets = [0, 256], sizes = [8, 128], strides = [1, 1]} : vector<8x384xf32> to vector<8x128xf32>
      %65 = vector.extract_strided_slice %47 {offsets = [0, 256], sizes = [8, 128], strides = [1, 1]} : vector<8x384xf32> to vector<8x128xf32>
      %66 = arith.mulf %55, %65 : vector<8x128xf32>
      %67 = arith.addf %64, %66 : vector<8x128xf32>
      %68 = math.tanh %67 : vector<8x128xf32>
      %cst_31 = arith.constant 1.000000e+00 : f32
      %69 = vector.broadcast %cst_31 : f32 to vector<8x128xf32>
      %70 = arith.subf %69, %63 : vector<8x128xf32>
      %71 = arith.mulf %70, %68 : vector<8x128xf32>
      %72 = arith.mulf %63, %9 : vector<8x128xf32>
      %73 = arith.addf %71, %72 : vector<8x128xf32>
      %74 = arith.truncf %73 : vector<8x128xf32> to vector<8x128xbf16>
      %c0_32 = arith.constant 0 : index
      %c0_33 = arith.constant 0 : index
      %75 = vector.load %arg10[%c0_32, %c0_33] : memref<128x256xbf16, #tpu.memory_space<vmem>>, vector<128x256xbf16>
      %cst_34 = arith.constant dense<0.000000e+00> : vector<8x256xf32>
      %76 = tpu.matmul %74, %75, %cst_34 {dimension_numbers = #tpu.dot_dimension_numbers<[1], [0], [0], [1], [0, 0, 1, 1], [], []>} : vector<8x128xbf16>, vector<128x256xbf16>, vector<8x256xf32> -> vector<8x256xf32>
      %c0_35 = arith.constant 0 : index
      %c0_36 = arith.constant 0 : index
      %77 = vector.load %arg11[%c0_35, %c0_36] : memref<1x256xf32, #tpu.memory_space<vmem>>, vector<1x256xf32>
      %78 = vector.broadcast %77 : vector<1x256xf32> to vector<8x256xf32>
      %79 = arith.addf %76, %78 : vector<8x256xf32>
      %80 = vector.shape_cast %79 : vector<8x256xf32> to vector<1x8x256xf32>
      %c0_37 = arith.constant 0 : index
      %c0_38 = arith.constant 0 : index
      %c0_39 = arith.constant 0 : index
      %81 = vector.load %arg12[%c0_37, %c0_38, %c0_39] : memref<1x8x256xf32, #tpu.memory_space<vmem>>, vector<1x8x256xf32>
      tpu.vector_store %arg12[%c0_37, %c0_38, %c0_39], %80 {strides = array<i32>} : memref<1x8x256xf32, #tpu.memory_space<vmem>>, vector<1x8x256xf32>,
      %82 = vector.shape_cast %73 : vector<8x128xf32> to vector<1x8x128xf32>
      %c0_40 = arith.constant 0 : index
      %c0_41 = arith.constant 0 : index
      %c0_42 = arith.constant 0 : index
      %83 = vector.load %arg13[%c0_40, %c0_41, %c0_42] : memref<1x8x128xf32, #tpu.memory_space<vmem>>, vector<1x8x128xf32>
      tpu.vector_store %arg13[%c0_40, %c0_41, %c0_42], %82 {strides = array<i32>} : memref<1x8x128xf32, #tpu.memory_space<vmem>>, vector<1x8x128xf32>,
      %c0_43 = arith.constant 0 : index
      %c0_44 = arith.constant 0 : index
      %84 = vector.load %arg15[%c0_43, %c0_44] : memref<8x128xf32, #tpu.memory_space<vmem>>, vector<8x128xf32>
      tpu.vector_store %arg15[%c0_43, %c0_44], %73 {strides = array<i32>} : memref<8x128xf32, #tpu.memory_space<vmem>>, vector<8x128xf32>,
      %85 = tpu.iota {dimensions = array<i32: 1>} : vector<8x256xi32>
      %cst_45 = arith.constant dense<0xFF800000> : vector<8xf32>
      %86 = vector.multi_reduction <maximumf>, %79, %cst_45 [1] : vector<8x256xf32> to vector<8xf32>
      %87 = vector.shape_cast %86 : vector<8xf32> to vector<8x1xf32>
      %88 = vector.broadcast %87 : vector<8x1xf32> to vector<8x256xf32>
      %89 = arith.cmpf oeq, %79, %88 : vector<8x256xf32>
      %c256_i32 = arith.constant 256 : i32
      %90 = vector.broadcast %c256_i32 : i32 to vector<8x256xi32>
      %91 = arith.select %89, %85, %90 : vector<8x256xi1>, vector<8x256xi32>
      %cst_46 = arith.constant dense<2147483647> : vector<8xi32>
      %92 = vector.multi_reduction <minsi>, %91, %cst_46 [1] : vector<8x256xi32> to vector<8xi32>
      %93 = vector.shape_cast %92 : vector<8xi32> to vector<8x1xi32>
      %94 = vector.broadcast %93 : vector<8x1xi32> to vector<8x256xi32>
      %95 = arith.cmpi eq, %85, %94 : vector<8x256xi32>
      %96 = arith.extui %95 : vector<8x256xi1> to vector<8x256xi32>
      %97 = arith.sitofp %96 : vector<8x256xi32> to vector<8x256xf32>
      %98 = arith.truncf %97 : vector<8x256xf32> to vector<8x256xbf16>
      %c0_47 = arith.constant 0 : index
      %c0_48 = arith.constant 0 : index
      %99 = vector.load %arg3[%c0_47, %c0_48] : memref<256x128xbf16, #tpu.memory_space<vmem>>, vector<256x128xbf16>
      %cst_49 = arith.constant dense<0.000000e+00> : vector<8x128xf32>
      %100 = tpu.matmul %98, %99, %cst_49 {dimension_numbers = #tpu.dot_dimension_numbers<[1], [0], [0], [1], [0, 0, 1, 1], [], []>} : vector<8x256xbf16>, vector<256x128xbf16>, vector<8x128xf32> -> vector<8x128xf32>
      %c0_50 = arith.constant 0 : index
      %c0_51 = arith.constant 0 : index
      %101 = vector.load %arg16[%c0_50, %c0_51] : memref<8x128xf32, #tpu.memory_space<vmem>>, vector<8x128xf32>
      tpu.vector_store %arg16[%c0_50, %c0_51], %100 {strides = array<i32>} : memref<8x128xf32, #tpu.memory_space<vmem>>, vector<8x128xf32>,
      %c0_i32_52 = arith.constant 0 : i32
      %102 = vector.broadcast %c0_i32_52 : i32 to vector<8x1xi32>
      %103 = arith.cmpi ne, %93, %102 : vector<8x1xi32>
      %c2_i32 = arith.constant 2 : i32
      %104 = vector.broadcast %c2_i32 : i32 to vector<8x1xi32>
      %105 = arith.cmpi ne, %93, %104 : vector<8x1xi32>
      %106 = arith.andi %103, %105 : vector<8x1xi1>
      %107 = arith.extui %106 : vector<8x1xi1> to vector<8x1xi32>
      %108 = arith.sitofp %107 : vector<8x1xi32> to vector<8x1xf32>
      %c0_53 = arith.constant 0 : index
      %c0_54 = arith.constant 0 : index
      %109 = vector.load %arg17[%c0_53, %c0_54] : memref<8x128xf32, #tpu.memory_space<vmem>>, vector<8x128xf32>
      %110 = vector.broadcast %108 : vector<8x1xf32> to vector<8x128xf32>
      %111 = arith.mulf %73, %110 : vector<8x128xf32>
      %112 = arith.addf %109, %111 : vector<8x128xf32>
      %c0_55 = arith.constant 0 : index
      %c0_56 = arith.constant 0 : index
      %113 = vector.load %arg17[%c0_55, %c0_56] : memref<8x128xf32, #tpu.memory_space<vmem>>, vector<8x128xf32>
      tpu.vector_store %arg17[%c0_55, %c0_56], %112 {strides = array<i32>} : memref<8x128xf32, #tpu.memory_space<vmem>>, vector<8x128xf32>,
      %c0_57 = arith.constant 0 : index
      %c0_58 = arith.constant 0 : index
      %114 = vector.load %arg18[%c0_57, %c0_58] : memref<8x1xf32, #tpu.memory_space<vmem>>, vector<8x1xf32>
      %115 = arith.addf %114, %108 : vector<8x1xf32>
      %c0_59 = arith.constant 0 : index
      %c0_60 = arith.constant 0 : index
      %116 = vector.load %arg18[%c0_59, %c0_60] : memref<8x1xf32, #tpu.memory_space<vmem>>, vector<8x1xf32>
      tpu.vector_store %arg18[%c0_59, %c0_60], %115 {strides = array<i32>} : memref<8x1xf32, #tpu.memory_space<vmem>>, vector<8x1xf32>,
    } else {
    }
    %c7_i32 = arith.constant 7 : i32
    %6 = arith.cmpi eq, %arg1, %c7_i32 : i32
    %7 = arith.extui %6 : i1 to i32
    %c0_i32_3 = arith.constant 0 : i32
    %8 = arith.cmpi ne, %7, %c0_i32_3 : i32
    scf.if %8 {
      %c0 = arith.constant 0 : index
      %c0_4 = arith.constant 0 : index
      %9 = vector.load %arg17[%c0, %c0_4] : memref<8x128xf32, #tpu.memory_space<vmem>>, vector<8x128xf32>
      %c0_5 = arith.constant 0 : index
      %c0_6 = arith.constant 0 : index
      %10 = vector.load %arg18[%c0_5, %c0_6] : memref<8x1xf32, #tpu.memory_space<vmem>>, vector<8x1xf32>
      %11 = vector.broadcast %10 : vector<8x1xf32> to vector<8x128xf32>
      %12 = arith.divf %9, %11 : vector<8x128xf32>
      %c0_7 = arith.constant 0 : index
      %c0_8 = arith.constant 0 : index
      %13 = vector.load %arg14[%c0_7, %c0_8] : memref<8x128xf32, #tpu.memory_space<vmem>>, vector<8x128xf32>
      tpu.vector_store %arg14[%c0_7, %c0_8], %12 {strides = array<i32>} : memref<8x128xf32, #tpu.memory_space<vmem>>, vector<8x128xf32>,
    } else {
    }
    return
  }
  func.func @transform_0(%arg0: i32, %arg1: i32) -> (i32, i32, i32) {
    %c0_i32 = arith.constant 0 : i32
    %c0_i32_0 = arith.constant 0 : i32
    %c0_i32_1 = arith.constant 0 : i32
    return %arg0, %c0_i32, %c0_i32_0 : i32, i32, i32
  }
  func.func @transform_1(%arg0: i32, %arg1: i32) -> (i32, i32) {
    %c0_i32 = arith.constant 0 : i32
    %c0_i32_0 = arith.constant 0 : i32
    %c0_i32_1 = arith.constant 0 : i32
    return %c0_i32, %c0_i32_0 : i32, i32
  }
  func.func @transform_2(%arg0: i32, %arg1: i32) -> (i32, i32) {
    %c0_i32 = arith.constant 0 : i32
    %c0_i32_0 = arith.constant 0 : i32
    %c0_i32_1 = arith.constant 0 : i32
    return %c0_i32, %c0_i32_0 : i32, i32
  }
  func.func @transform_3(%arg0: i32, %arg1: i32) -> (i32, i32) {
    %c0_i32 = arith.constant 0 : i32
    %c0_i32_0 = arith.constant 0 : i32
    %c0_i32_1 = arith.constant 0 : i32
    return %c0_i32, %c0_i32_0 : i32, i32
  }
  func.func @transform_4(%arg0: i32, %arg1: i32) -> (i32, i32) {
    %c0_i32 = arith.constant 0 : i32
    %c0_i32_0 = arith.constant 0 : i32
    %c0_i32_1 = arith.constant 0 : i32
    return %c0_i32, %c0_i32_0 : i32, i32
  }
  func.func @transform_5(%arg0: i32, %arg1: i32) -> (i32, i32) {
    %c0_i32 = arith.constant 0 : i32
    %c0_i32_0 = arith.constant 0 : i32
    %c0_i32_1 = arith.constant 0 : i32
    return %c0_i32, %c0_i32_0 : i32, i32
  }
  func.func @transform_6(%arg0: i32, %arg1: i32) -> (i32, i32) {
    %c0_i32 = arith.constant 0 : i32
    %c0_i32_0 = arith.constant 0 : i32
    %c0_i32_1 = arith.constant 0 : i32
    return %c0_i32, %c0_i32_0 : i32, i32
  }
  func.func @transform_7(%arg0: i32, %arg1: i32) -> (i32, i32) {
    %c0_i32 = arith.constant 0 : i32
    %c0_i32_0 = arith.constant 0 : i32
    %c0_i32_1 = arith.constant 0 : i32
    return %c0_i32, %c0_i32_0 : i32, i32
  }
  func.func @transform_8(%arg0: i32, %arg1: i32) -> (i32, i32) {
    %c0_i32 = arith.constant 0 : i32
    %c0_i32_0 = arith.constant 0 : i32
    %c0_i32_1 = arith.constant 0 : i32
    return %c0_i32, %c0_i32_0 : i32, i32
  }
  func.func @transform_9(%arg0: i32, %arg1: i32) -> (i32, i32) {
    %c0_i32 = arith.constant 0 : i32
    %c0_i32_0 = arith.constant 0 : i32
    %c0_i32_1 = arith.constant 0 : i32
    return %c0_i32, %c0_i32_0 : i32, i32
  }
  func.func @transform_10(%arg0: i32, %arg1: i32) -> (i32, i32, i32) {
    %c0_i32 = arith.constant 0 : i32
    %c0_i32_0 = arith.constant 0 : i32
    return %arg1, %arg0, %c0_i32 : i32, i32, i32
  }
  func.func @transform_11(%arg0: i32, %arg1: i32) -> (i32, i32, i32) {
    %c0_i32 = arith.constant 0 : i32
    %c0_i32_0 = arith.constant 0 : i32
    return %arg1, %arg0, %c0_i32 : i32, i32, i32
  }
  func.func @transform_12(%arg0: i32, %arg1: i32) -> (i32, i32) {
    %c0_i32 = arith.constant 0 : i32
    %c0_i32_0 = arith.constant 0 : i32
    return %arg0, %c0_i32 : i32, i32
  }
}

module attributes {stable_mosaic.version = 11 : i64} {
  func.func @_recon_kernel(%arg0: i32, %arg1: i32, %arg2: memref<1x8x384xf32, #tpu.memory_space<vmem>>, %arg3: memref<8x384xf32, #tpu.memory_space<vmem>>, %arg4: memref<128x384xbf16, #tpu.memory_space<vmem>>, %arg5: memref<1x384xf32, #tpu.memory_space<vmem>>, %arg6: memref<1x8x128xf32, #tpu.memory_space<vmem>>, %arg7: memref<8x128xf32, #tpu.memory_space<vmem>>) attributes {dimension_semantics = [#tpu.dimension_semantics<parallel>, #tpu.dimension_semantics<arbitrary>], iteration_bounds = array<i64: 2, 8>, scalar_prefetch = 0 : i64, scratch_operands = 1 : i64, tpu.core_type = #tpu.core_type<tc>, window_params = [{transform_indices = @transform_0, window_bounds = array<i64: 1, 8, 384>}, {transform_indices = @transform_1, window_bounds = array<i64: 8, 384>}, {pipeline_mode = #tpu.pipeline_mode<synchronous>, transform_indices = @transform_2, window_bounds = array<i64: 128, 384>}, {pipeline_mode = #tpu.pipeline_mode<synchronous>, transform_indices = @transform_3, window_bounds = array<i64: 1, 384>}, {transform_indices = @transform_4, window_bounds = array<i64: 1, 8, 128>}]} {
    %c0_i32 = arith.constant 0 : i32
    %0 = arith.cmpi eq, %arg1, %c0_i32 : i32
    %1 = arith.extui %0 : i1 to i32
    %c0_i32_0 = arith.constant 0 : i32
    %2 = arith.cmpi ne, %1, %c0_i32_0 : i32
    scf.if %2 {
      %cst_19 = arith.constant 0.000000e+00 : f32
      %43 = vector.broadcast %cst_19 : f32 to vector<8x128xf32>
      %c0_20 = arith.constant 0 : index
      %c0_21 = arith.constant 0 : index
      %44 = vector.load %arg7[%c0_20, %c0_21] : memref<8x128xf32, #tpu.memory_space<vmem>>, vector<8x128xf32>
      tpu.vector_store %arg7[%c0_20, %c0_21], %43 {strides = array<i32>} : memref<8x128xf32, #tpu.memory_space<vmem>>, vector<8x128xf32>,
    } else {
    }
    %c0 = arith.constant 0 : index
    %c0_1 = arith.constant 0 : index
    %3 = vector.load %arg7[%c0, %c0_1] : memref<8x128xf32, #tpu.memory_space<vmem>>, vector<8x128xf32>
    %c0_2 = arith.constant 0 : index
    %c0_3 = arith.constant 0 : index
    %c0_4 = arith.constant 0 : index
    %4 = vector.load %arg2[%c0_2, %c0_3, %c0_4] : memref<1x8x384xf32, #tpu.memory_space<vmem>>, vector<1x8x384xf32>
    %5 = vector.shape_cast %4 : vector<1x8x384xf32> to vector<8x384xf32>
    %c0_5 = arith.constant 0 : index
    %c0_6 = arith.constant 0 : index
    %6 = vector.load %arg3[%c0_5, %c0_6] : memref<8x384xf32, #tpu.memory_space<vmem>>, vector<8x384xf32>
    %7 = arith.addf %5, %6 : vector<8x384xf32>
    %8 = arith.truncf %3 : vector<8x128xf32> to vector<8x128xbf16>
    %c0_7 = arith.constant 0 : index
    %c0_8 = arith.constant 0 : index
    %9 = vector.load %arg4[%c0_7, %c0_8] : memref<128x384xbf16, #tpu.memory_space<vmem>>, vector<128x384xbf16>
    %cst = arith.constant dense<0.000000e+00> : vector<8x384xf32>
    %10 = tpu.matmul %8, %9, %cst {dimension_numbers = #tpu.dot_dimension_numbers<[1], [0], [0], [1], [0, 0, 1, 1], [], []>} : vector<8x128xbf16>, vector<128x384xbf16>, vector<8x384xf32> -> vector<8x384xf32>
    %c0_9 = arith.constant 0 : index
    %c0_10 = arith.constant 0 : index
    %11 = vector.load %arg5[%c0_9, %c0_10] : memref<1x384xf32, #tpu.memory_space<vmem>>, vector<1x384xf32>
    %12 = vector.broadcast %11 : vector<1x384xf32> to vector<8x384xf32>
    %13 = arith.addf %10, %12 : vector<8x384xf32>
    %14 = vector.extract_strided_slice %7 {offsets = [0, 0], sizes = [8, 128], strides = [1, 1]} : vector<8x384xf32> to vector<8x128xf32>
    %15 = vector.extract_strided_slice %13 {offsets = [0, 0], sizes = [8, 128], strides = [1, 1]} : vector<8x384xf32> to vector<8x128xf32>
    %16 = arith.addf %14, %15 : vector<8x128xf32>
    %17 = arith.negf %16 : vector<8x128xf32>
    %18 = math.exp %17 : vector<8x128xf32>
    %cst_11 = arith.constant 1.000000e+00 : f32
    %19 = vector.broadcast %cst_11 : f32 to vector<8x128xf32>
    %20 = arith.addf %19, %18 : vector<8x128xf32>
    %21 = arith.divf %19, %20 : vector<8x128xf32>
    %22 = vector.extract_strided_slice %7 {offsets = [0, 128], sizes = [8, 128], strides = [1, 1]} : vector<8x384xf32> to vector<8x128xf32>
    %23 = vector.extract_strided_slice %13 {offsets = [0, 128], sizes = [8, 128], strides = [1, 1]} : vector<8x384xf32> to vector<8x128xf32>
    %24 = arith.addf %22, %23 : vector<8x128xf32>
    %25 = arith.negf %24 : vector<8x128xf32>
    %26 = math.exp %25 : vector<8x128xf32>
    %cst_12 = arith.constant 1.000000e+00 : f32
    %27 = vector.broadcast %cst_12 : f32 to vector<8x128xf32>
    %28 = arith.addf %27, %26 : vector<8x128xf32>
    %29 = arith.divf %27, %28 : vector<8x128xf32>
    %30 = vector.extract_strided_slice %7 {offsets = [0, 256], sizes = [8, 128], strides = [1, 1]} : vector<8x384xf32> to vector<8x128xf32>
    %31 = vector.extract_strided_slice %13 {offsets = [0, 256], sizes = [8, 128], strides = [1, 1]} : vector<8x384xf32> to vector<8x128xf32>
    %32 = arith.mulf %21, %31 : vector<8x128xf32>
    %33 = arith.addf %30, %32 : vector<8x128xf32>
    %34 = math.tanh %33 : vector<8x128xf32>
    %cst_13 = arith.constant 1.000000e+00 : f32
    %35 = vector.broadcast %cst_13 : f32 to vector<8x128xf32>
    %36 = arith.subf %35, %29 : vector<8x128xf32>
    %37 = arith.mulf %36, %34 : vector<8x128xf32>
    %38 = arith.mulf %29, %3 : vector<8x128xf32>
    %39 = arith.addf %37, %38 : vector<8x128xf32>
    %c0_14 = arith.constant 0 : index
    %c0_15 = arith.constant 0 : index
    %40 = vector.load %arg7[%c0_14, %c0_15] : memref<8x128xf32, #tpu.memory_space<vmem>>, vector<8x128xf32>
    tpu.vector_store %arg7[%c0_14, %c0_15], %39 {strides = array<i32>} : memref<8x128xf32, #tpu.memory_space<vmem>>, vector<8x128xf32>,
    %41 = vector.shape_cast %39 : vector<8x128xf32> to vector<1x8x128xf32>
    %c0_16 = arith.constant 0 : index
    %c0_17 = arith.constant 0 : index
    %c0_18 = arith.constant 0 : index
    %42 = vector.load %arg6[%c0_16, %c0_17, %c0_18] : memref<1x8x128xf32, #tpu.memory_space<vmem>>, vector<1x8x128xf32>
    tpu.vector_store %arg6[%c0_16, %c0_17, %c0_18], %41 {strides = array<i32>} : memref<1x8x128xf32, #tpu.memory_space<vmem>>, vector<1x8x128xf32>,
    return
  }
  func.func @transform_0(%arg0: i32, %arg1: i32) -> (i32, i32, i32) {
    %c0_i32 = arith.constant 0 : i32
    %c0_i32_0 = arith.constant 0 : i32
    return %arg1, %arg0, %c0_i32 : i32, i32, i32
  }
  func.func @transform_1(%arg0: i32, %arg1: i32) -> (i32, i32) {
    %c0_i32 = arith.constant 0 : i32
    %c0_i32_0 = arith.constant 0 : i32
    return %arg0, %c0_i32 : i32, i32
  }
  func.func @transform_2(%arg0: i32, %arg1: i32) -> (i32, i32) {
    %c0_i32 = arith.constant 0 : i32
    %c0_i32_0 = arith.constant 0 : i32
    %c0_i32_1 = arith.constant 0 : i32
    return %c0_i32, %c0_i32_0 : i32, i32
  }
  func.func @transform_3(%arg0: i32, %arg1: i32) -> (i32, i32) {
    %c0_i32 = arith.constant 0 : i32
    %c0_i32_0 = arith.constant 0 : i32
    %c0_i32_1 = arith.constant 0 : i32
    return %c0_i32, %c0_i32_0 : i32, i32
  }
  func.func @transform_4(%arg0: i32, %arg1: i32) -> (i32, i32, i32) {
    %c0_i32 = arith.constant 0 : i32
    %c0_i32_0 = arith.constant 0 : i32
    return %arg1, %arg0, %c0_i32 : i32, i32, i32
  }
}

</mosaic_0001>

<bundles_post_ra>
// kernel: caption_generator_forward.3
= control target key start
LH: loop header
LB: loop body
LE: loop exit
PB: predicated region body
PF: predicated region fallthrough
CT: control target
= control target key end

     0   :  { %s876_s15 = smov 0   ;;  %s878_s16 = smov 0   ;;  %s1028_s0 = inlined_call_operand.vmem [shape: f32[8,16,384], index: 0, kind: input, shape index: {}]   ;;  %s1029_s1 = inlined_call_operand.vmem [shape: f32[16,384], index: 1, kind: input, shape index: {}]   ;;  %s1030_s2 = inlined_call_operand.vmem [shape: bf16[128,384], index: 2, kind: input, shape index: {}]   ;;  %s1031_s3 = inlined_call_operand.vmem [shape: f32[1,384], index: 3, kind: input, shape index: {}]   ;;  %s1032_s4 = inlined_call_operand.vmem [shape: f32[8,16,128], index: 4, kind: output, shape index: {}]  }
   0x1   :  { %s880_s17 = smov 0   ;;  %s882_s18 = smov 0  }
   0x2   :  { %s884_s19 = smov 0  }
   0x3 LB: > { %s23_s20 = sadd.s32 1, %s837_s17  ;;  %s26_s21 = sadd.s32 1, %s841_s18  ;;  %s845_s19 = sphi %s884_s19, %s14_s19   ;;  %s841_s18 = sphi %s882_s18, %s1036_s18   ;;  %s837_s17 = sphi %s880_s17, %s1035_s17   ;;  %s833_s16 = sphi %s878_s16, %s1034_s16   ;;  %s829_s15 = sphi %s876_s15, %s1033_s15  }
   0x4   : > { %p24_p0 = scmp.ge.s32.totalorder %s23_s20, 8  ;;  %p655_p1 = scmp.ge.s32.totalorder %s845_s19, 1 }
   0x5   : > { %p192_p2 = scmp.lt.s32.totalorder %s845_s19, 17 }
   0x6   : > { %s1038_s20 = smov (%p24_p0, %s23_s20), 0  ;;  %s1040_s21 = smov (!%p24_p0, %s26_s21), %s841_s18 }
   0x7   : > { %p193_p3 = pnand %p655_p1, %p192_p2  ;;  %p28_p4 = scmp.ge.s32.totalorder %s1040_s21, 2 }
   0x8   : > { %p230_p5 = scmp.lt.s32.totalorder (!%p193_p3), %s829_s15, 7  ;;  %p232_p6 = scmp.lt.s32.totalorder (!%p193_p3), %s833_s16, 1 }
   0x9   : > { %s1042_s21 = smov (%p28_p4, %s1040_s21), 0  ;;  %196 = sbr.rel (%p193_p3) target bundleno = 320 (0x140), region = 36 }
   0xa   : > { %p660_p7 = scmp.ne.s32.totalorder (!%p193_p3), %s829_s15, 0 }
  0x10   : > { %s231_s22 = scalar_select %p230_p5, %s829_s15, 7 }
  0x11   : > { %s1044_s16 = smov (!%p232_p6, %s833_s16), 1  ;;  %256 = sbr.rel (%p660_p7) target bundleno = 24 (0x18), region = 40 }
  0x12   : > { %s719_s23 = smul.u32 6, %s231_s22  ;;  %s658_s24 = sshll.u32 %s231_s22, 1  ;;  %v847_v0 = vmov (!%p660_p7), 0.0  }
  0x13   : > { %s718_s25 = smul.u32 3, %s1044_s16  ;;  %s249_s26 = sadd.s32 %s658_s24, %s1044_s16  ;;  %257 = vst [vmem:[#allocation2] sm:$0xff] (!%p660_p7), %v847_v0 }
  0x14   : > { %s720_s27 = smul.u32 24, %s1044_s16  ;;  %s659_s28 = sshll.u32 %s249_s26, 3 }
  0x15   : > { %s236_s29 = sadd.s32 %s719_s23, %s718_s25  ;;  %s913_s6 = scalar_lea.vmem %s1032_s4, %s659_s28 }
  0x16   : > { %s656_s7 = sshll.u32 %s236_s29, 3  ;;  %s918_s10 = scalar_lea.vmem %s1029_s1, %s720_s27 }
  0x17   : > { %s923_s13 = scalar_lea.vmem %s1028_s0, %s656_s7 }
  0x18 PF: > { %v765_v1 = vld [vmem:[%s1030_s2 + $0x4] ss:$12 sps:$4 sm:$0xff]   ;;  %v767_v2 = vld [vmem:[%s1030_s2] ss:$12 sps:$4 sm:$0xff]   ;;  %v848_v3 = vmov 0.0   ;;  %v849_v4 = vmov 0   ;;  %v303_v29 = vlaneseq }
  0x19   : > { %698 = vmatprep.subr.bf16.mxu1 %v848_v3  ;;  %478 = vmatprep.mubr.bf16.mxu0 %v849_v4  ;;  %v768_v5 = vld [vmem:[%s1030_s2 + $0x1c] ss:$12 sps:$4 sm:$0xff]   ;;  %vm850_vm0 = vmmov 0   ;;  %v770_v6 = vld [vmem:[%s1030_s2 + $0x18] ss:$12 sps:$4 sm:$0xff]   ;;  %v261_v61 = vld [vmem:[%s923_s13 + $0x10] sm:$0xff] }
  0x1a   : > { %446 = vmatprep.subr.bf16.mxu0 %v765_v1  ;;  %714 = vmatprep.mubr.msk.bf16.mxu1 %vm850_vm0, %v848_v3  ;;  %v771_v7 = vld [vmem:[%s1030_s2 + $0x34] ss:$12 sps:$4 sm:$0xff]   ;;  %v773_v8 = vld [vmem:[%s1030_s2 + $0x30] ss:$12 sps:$4 sm:$0xff]   ;;  %v774_v9 = vld [vmem:[%s1030_s2 + $0x4c] ss:$12 sps:$4 sm:$0xff]  }
  0x1b   : > { %447 = vmatpush1.bf16.msra.mxu0 %v767_v2  ;;  %v786_v10 = vld [vmem:[%s1030_s2 + $0x8] ss:$12 sps:$4 sm:$0xff]   ;;  %v777_v12 = vld [vmem:[%s1030_s2 + $0x64] ss:$12 sps:$4 sm:$0xff]   ;;  %v790_v13 = vld [vmem:[%s1030_s2 + $0x20] ss:$12 sps:$4 sm:$0xff]  }
  0x1c   : > { %448 = vmatprep.subr.bf16.mxu0 %v768_v5  ;;  %v776_v11 = vld [vmem:[%s1030_s2 + $0x48] ss:$12 sps:$4 sm:$0xff]   ;;  %699 = vmatpush3.bf16.msra.mxu1 %v786_v10  ;;  %v779_v14 = vld [vmem:[%s1030_s2 + $0x60] ss:$12 sps:$4 sm:$0xff]   ;;  %v791_v16 = vld [vmem:[%s1030_s2 + $0x38] ss:$12 sps:$4 sm:$0xff]  }
  0x1d   : > { %700 = vmatprep.subr.bf16.mxu1 %v848_v3  ;;  %v780_v15 = vld [vmem:[%s1030_s2 + $0x7c] ss:$12 sps:$4 sm:$0xff]   ;;  %v782_v17 = vld [vmem:[%s1030_s2 + $0x78] ss:$12 sps:$4 sm:$0xff]   ;;  %v783_v18 = vld [vmem:[%s1030_s2 + $0x94] ss:$12 sps:$4 sm:$0xff]  }
  0x1e   : > { %v792_v19 = vld [vmem:[%s1030_s2 + $0x50] ss:$12 sps:$4 sm:$0xff]   ;;  %v787_v21 = vld [vmem:[%s1030_s2 + $0xac] ss:$12 sps:$4 sm:$0xff]   ;;  %v793_v22 = vld [vmem:[%s1030_s2 + $0x68] ss:$12 sps:$4 sm:$0xff]  }
  0x1f   : > { %449 = vmatpush1.bf16.msra.mxu0 %v770_v6  ;;  %v785_v20 = vld [vmem:[%s1030_s2 + $0x90] ss:$12 sps:$4 sm:$0xff]   ;;  %v789_v23 = vld [vmem:[%s1030_s2 + $0xa8] ss:$12 sps:$4 sm:$0xff]   ;;  %v989_v24 = vld [vmem:[#allocation2] sm:$0xff]  ;;  %v304_v30 = vshrl.u32 %v303_v29, 7 }
  0x20   : > { %450 = vmatprep.subr.bf16.mxu0 %v771_v7  ;;  %701 = vmatpush3.bf16.msra.mxu1 %v790_v13  ;;  %v794_v25 = vld [vmem:[%s1030_s2 + $0x80] ss:$12 sps:$4 sm:$0xff]   ;;  %v268_v26 = vpack.c.bf16 %v989_v24, %v989_v24  ;;  %v795_v27 = vld [vmem:[%s1030_s2 + $0x98] ss:$12 sps:$4 sm:$0xff]   ;;  %v796_v28 = vld [vmem:[%s1030_s2 + $0xb0] ss:$12 sps:$4 sm:$0xff]  }
  0x21   : > { %702 = vmatprep.subr.bf16.mxu1 %v848_v3  ;;  %v305_v31 = vsub.s32 0, %v304_v30  ;;  %v301_v32 = vld [vmem:[%s1031_s3] sm:$0x7]  ;;  %v309_v33 = vsub.s32 1, %v304_v30  ;;  %v260_v39 = vld [vmem:[%s923_s13 + $0x8] sm:$0xff]  ;;  %v313_v58 = vsub.s32 2, %v304_v30 }
  0x22   : > { %v259_v34 = vld [vmem:[%s923_s13] sm:$0xff]  ;;  %v263_v40 = vld [vmem:[%s918_s10 + $0x8] sm:$0xff]  ;;  %v264_v62 = vld [vmem:[%s918_s10 + $0x10] sm:$0xff] }
  0x23   : > { %451 = vmatpush1.bf16.msra.mxu0 %v773_v8  ;;  %v262_v35 = vld [vmem:[%s918_s10] sm:$0xff]  ;;  %v306_v36 = vrot.slane %v301_v32, %v305_v31  ;;  %v310_v37 = vrot.slane %v301_v32, %v309_v33  ;;  %v266_v44 = vadd.f32 %v263_v40, %v260_v39  ;;  %v314_v59 = vrot.slane %v301_v32, %v313_v58 }
  0x24   : > { %452 = vmatprep.subr.bf16.mxu0 %v774_v9  ;;  %703 = vmatpush3.bf16.msra.mxu1 %v791_v16  ;;  %v265_v38 = vadd.f32 %v262_v35, %v259_v34  ;;  %v267_v1 = vadd.f32 %v264_v62, %v261_v61 }
  0x25   : > { %704 = vmatprep.subr.bf16.mxu1 %v848_v3 }
  0x27   : > { %453 = vmatpush1.bf16.msra.mxu0 %v776_v11 }
  0x28   : > { %454 = vmatprep.subr.bf16.mxu0 %v777_v12  ;;  %705 = vmatpush3.bf16.msra.mxu1 %v792_v19 }
  0x29   : > { %706 = vmatprep.subr.bf16.mxu1 %v848_v3 }
  0x2b   : > { %455 = vmatpush1.bf16.msra.mxu0 %v779_v14 }
  0x2c   : > { %456 = vmatprep.subr.bf16.mxu0 %v780_v15  ;;  %707 = vmatpush3.bf16.msra.mxu1 %v793_v22 }
  0x2d   : > { %708 = vmatprep.subr.bf16.mxu1 %v848_v3 }
  0x2f   : > { %457 = vmatpush1.bf16.msra.mxu0 %v782_v17 }
  0x30   : > { %458 = vmatprep.subr.bf16.mxu0 %v783_v18  ;;  %709 = vmatpush3.bf16.msra.mxu1 %v794_v25 }
  0x31   : > { %710 = vmatprep.subr.bf16.mxu1 %v848_v3 }
  0x33   : > { %459 = vmatpush1.bf16.msra.mxu0 %v785_v20 }
  0x34   : > { %460 = vmatprep.subr.bf16.mxu0 %v787_v21  ;;  %711 = vmatpush3.bf16.msra.mxu1 %v795_v27 }
  0x35   : > { %712 = vmatprep.subr.bf16.mxu1 %v848_v3 }
  0x37   : > { %461 = vmatpush1.bf16.msra.mxu0 %v789_v23 }
  0x38   : > { %713 = vmatpush3.bf16.msra.mxu1 %v796_v28 }
  0x3a   : > { %479 = vmatmul.mubr.bf16.vlgmr.msra.gmra.mrb[0].mxu0 %v268_v26 }
  0x3b   : > { %715 = vmatmul.mubr.bf16.vlgmr.msra.gmra.mrb[0].mxu1 %v268_v26 }
 0x10d   : > { %v480_v41 = vpop.f32.mrb[0].mxu0 }
 0x10e   : > { %v481_v42 = vadd.f32 %v480_v41, %v306_v36  ;;  %v482_v43 = vpop.f32.mrb[1].mxu0  ;;  %v521_v51 = vpop.f32.mrb[0].mxu1 }
 0x10f   : > { %v483_v45 = vadd.f32 %v482_v43, %v310_v37  ;;  %v484_v46 = vpop.f32.mrb[2].mxu0  ;;  %v716_v53 = vpop.f32.mrb[1].mxu1  ;;  %v522_v0 = vadd.f32 %v521_v51, %v314_v59 }
 0x110   : > { %v527_v47 = vadd.f32 %v481_v42, %v265_v38  ;;  %v485_v48 = vpop.f32.mrb[3].mxu0  ;;  %v524_v54 = vpop.f32.mrb[2].mxu1 }
 0x111   : > { %v534_v50 = vadd.f32 %v483_v45, %v266_v44  ;;  %v717_v55 = vpop.f32.mrb[3].mxu1 }
 0x112   : > { %v685_v49 = vmul.f32 -1.442695, %v527_v47 }
 0x113   : > { %v686_v52 = vmul.f32 -1.442695, %v534_v50 }
 0x114   : > { %797 = vpow2.f32 %v685_v49 }
 0x115   : > { %799 = vpow2.f32 %v686_v52 }
 0x11e   : > { %v798_v56 = vpop.eup %797 }
 0x11f   : > { %v531_v57 = vadd.f32 1.0, %v798_v56  ;;  %v800_v60 = vpop.eup %799 }
 0x120   : > { %v538_v63 = vadd.f32 1.0, %v800_v60 }
 0x121   : > { %801 = vrcp.f32 %v531_v57 }
 0x122   : > { %803 = vrcp.f32 %v538_v63 }
 0x12b   : > { %v802_v2 = vpop.eup %801 }
 0x12c   : > { %v541_v3 = vmul.f32 %v802_v2, %v522_v0  ;;  %v804_v5 = vpop.eup %803 }
 0x12d   : > { %v544_v6 = vsub.f32 1.0, %v804_v5  ;;  %v546_v8 = vmul.f32 %v804_v5, %v989_v24 }
 0x12e   : > { %v542_v4 = vadd.f32 %v541_v3, %v267_v1 }
 0x130   : > { %805 = vtanh.f32 %v542_v4 }
 0x13a   : > { %v806_v7 = vpop.eup %805 }
 0x13b   : > { %v545_v9 = vmul.f32 %v806_v7, %v544_v6 }
 0x13d   : > { %v547_v10 = vadd.f32 %v546_v8, %v545_v9 }
 0x13f   : > { %548 = vst [vmem:[#allocation2] sm:$0xff] %v547_v10  ;;  %549 = vst [vmem:[%s913_s6] sm:$0xff] %v547_v10 }
 0x140 PF: > { %s14_s19 = sadd.s32 1, %s845_s19   ;;  %s1033_s15 = smov %s837_s17 }
 0x141   : > { %p11_p8 = scmp.ge.s32.totalorder %s14_s19, 18   ;;  %s1034_s16 = smov %s841_s18 }
 0x142   : > { %s1035_s17 = smov %s1038_s20  ;;  %s1036_s18 = smov %s1042_s21 }
 0x143   :  { %13 = sbr.rel (!%p11_p8) target bundleno = 3 (0x3), region = 73 }

// kernel: caption_generator_forward.2
= control target key start
LH: loop header
LB: loop body
LE: loop exit
PB: predicated region body
PF: predicated region fallthrough
CT: control target
= control target key end

     0   :  { %s4605_s0 = inlined_call_operand.hbm [shape: f32[16,8,128], index: 0, kind: input, shape index: {}]   ;;  %s4606_s1 = inlined_call_operand.hbm [shape: bf16[256,128], index: 1, kind: input, shape index: {}]   ;;  %s4607_s2 = inlined_call_operand.hbm [shape: bf16[128,128], index: 2, kind: input, shape index: {}]   ;;  %s4608_s3 = inlined_call_operand.hbm [shape: bf16[128,384], index: 3, kind: input, shape index: {}]   ;;  %s4609_s4 = inlined_call_operand.hbm [shape: bf16[128,384], index: 4, kind: input, shape index: {}]   ;;  %s4610_s5 = inlined_call_operand.hbm [shape: bf16[128,384], index: 5, kind: input, shape index: {}]   ;;  %s4611_s6 = inlined_call_operand.vmem [shape: f32[1,384], index: 6, kind: input, shape index: {}]   ;;  %s4612_s7 = inlined_call_operand.vmem [shape: f32[1,384], index: 7, kind: input, shape index: {}]   ;;  %s4613_s8 = inlined_call_operand.hbm [shape: bf16[128,256], index: 8, kind: input, shape index: {}]   ;;  %s4614_s9 = inlined_call_operand.vmem [shape: f32[1,256], index: 9, kind: input, shape index: {}]   ;;  %s4615_s10 = inlined_call_operand.hbm [shape: f32[8,16,256], index: 10, kind: output, shape index: {0}]   ;;  %s4616_s11 = inlined_call_operand.vmem [shape: f32[8,16,128], index: 11, kind: output, shape index: {1}]   ;;  %s4617_s12 = inlined_call_operand.vmem [shape: f32[16,128], index: 12, kind: output, shape index: {2}]  }
   0x1   :  { %4637 = sst [smem:[#allocation31_spill]] %s4605_s0 }
   0x2   :  { %4638 = sst [smem:[#allocation32_spill]] %s4606_s1 }
   0x3   :  { %4639 = sst [smem:[#allocation33_spill]] %s4607_s2 }
   0x4   :  { %4640 = sst [smem:[#allocation34_spill]] %s4608_s3 }
   0x5   :  { %4641 = sst [smem:[#allocation35_spill]] %s4609_s4 }
   0x6   :  { %4642 = sst [smem:[#allocation36_spill]] %s4610_s5 }
   0x7   :  { %4643 = sst [smem:[#allocation37_spill]] %s4611_s6 }
   0x8   :  { %4644 = sst [smem:[#allocation38_spill]] %s4612_s7 }
   0x9   :  { %4645 = sst [smem:[#allocation39_spill]] %s4613_s8 }
   0xa   :  { %4646 = sst [smem:[#allocation40_spill]] %s4614_s9 }
   0xb   :  { %4647 = sst [smem:[#allocation41_spill]] %s4615_s10 }
   0xc   :  { %4648 = sst [smem:[#allocation42_spill]] %s4616_s11 }
   0xd   :  { %4649 = sst [smem:[#allocation43_spill]] %s4617_s12 }
   0xe   :  { %18 = vsyncpa [#allocation7], 0 }
   0xf   :  { %20 = vsyncpa [#allocation7 + $0x1], 0 }
  0x10   :  { %21 = vsyncpa [#allocation10], 0 }
  0x11   :  { %22 = vsyncpa [#allocation13], 0 }
  0x12   :  { %23 = vsyncpa [#allocation16], 0 }
  0x13   :  { %24 = vsyncpa [#allocation8], 0 }
  0x14   :  { %26 = vsyncpa [#allocation8 + $0x1], 0  ;;  %s3932_s21 = smov 0   ;;  %s3934_s22 = smov 0  }
  0x15   :  { %s3936_s23 = smov 0   ;;  %s3938_s24 = smov 0  }
  0x16   :  { %s3940_s25 = smov 0   ;;  %s3942_s26 = smov 0  }
  0x17   :  { %s3944_s27 = smov 0   ;;  %s3946_s28 = smov 0  }
  0x18   :  { %s3948_s29 = smov 0   ;;  %s3950_s30 = smov 0  }
  0x19   :  { %s3952_s13 = smov 0  }
  0x1a LB: > { %4650 = sst [smem:[#allocation24_spill]] %s3802_s21  ;;  %s2777_s14 = sadd.s32 4294967295, %s3842_s13   ;;  %s3842_s13 = sphi %s3952_s13, %s32_s13   ;;  %s3838_s30 = sphi %s3950_s30, %s4715_s30   ;;  %s3834_s29 = sphi %s3948_s29, %s4714_s29   ;;  %s3830_s28 = sphi %s3946_s28, %s4713_s28   ;;  %s3826_s27 = sphi %s3944_s27, %s4712_s27   ;;  %s3822_s26 = sphi %s3942_s26, %s4711_s26   ;;  %s3818_s25 = sphi %s3940_s25, %s4710_s25   ;;  %s3814_s24 = sphi %s3938_s24, %s4709_s24   ;;  %s3810_s23 = sphi %s3936_s23, %s4708_s23   ;;  %s3806_s22 = sphi %s3934_s22, %s4707_s22   ;;  %s3802_s21 = sphi %s3932_s21, %s4704_s21  }
  0x1b   : > { %4651 = sst [smem:[#allocation25_spill]] %s3806_s22  ;;  %p2779_p0 = scmp.ge.s32.totalorder %s3842_s13, 1 }
  0x1c   : > { %4652 = sst [smem:[#allocation26_spill]] %s3826_s27  ;;  %p3989_p1 = scmp.eq.s32.totalorder %s2777_s14, 0 }
  0x1d   : > { %4653 = sst [smem:[#allocation27_spill]] %s3830_s28  ;;  %p3993_p2 = scmp.eq.s32.totalorder %s2777_s14, 15 }
  0x1e   : > { %s4654_s15 = scalar_select %p3989_p1, 1, 0 }
  0x1f   : > { %s4655_s16 = scalar_select %p3993_p2, 1, 0 }
  0x20   : > { %p346_p3 = scmp.lt.s32.totalorder %s3842_s13, 17  ;;  %s3844_s18 = smov [#allocation9]  }
  0x21   : > { %4656 = sst [smem:[#allocation28_spill]] %s4655_s16  ;;  %s358_s19 = sshll.u32 %s3844_s18, 4  ;;  %s359_s19 = int_to_ptr.vmem [resolvable:$true] %s358_s19 }
  0x22   : > { %p3998_p4 = pnand %p2779_p0, %p346_p3  ;;  %s3845_s14 = smov [#allocation12]  }
  0x23   : > { %s384_s10 = sshll.u32 %s3845_s14, 4  ;;  %s4660_s1 = sld [smem:[#allocation32_spill]]  ;;  %s4010_s10 = int_to_ptr.vmem [resolvable:$true] %s384_s10 }
  0x24   : > { %s4657_s17 = scalar_select %p3998_p4, 1, 0 }
  0x25   : > { %p3152_p5 = pneg %p3998_p4 }
  0x26   : > { %4658 = sst [smem:[#allocation29_spill]] %s4657_s17 }
  0x27   : > { %p4006_p6 = pnand %p3152_p5, %p3989_p1 }
  0x29   : > { %s3510_s7 = scalar_lea.hbm %s4660_s1, 2048  ;;  %p4020_p8 = pneg %p4006_p6 }
  0x2a   : > { %p3511_p7 = scmp.ne.s32.totalorder %s4660_s1, %s3510_s7  ;;  %p3517_p11 = scmp.lt.u32.totalorder %s3510_s7, %s4660_s1 }
  0x2c   : > { %p3513_p9 = pnand %p4020_p8, %p3511_p7 }
  0x2e   : > { %p3514_p10 = pneg %p3513_p9 }
  0x30   : > { %p3519_p12 = pnand %p3517_p11, %p3514_p10 }
  0x32   : > { %3522 = shalt.err (!%p3519_p12)
}
  0x33   : > { %s3523_s6 = scalar_lea.vmem %s359_s19, 2048  ;;  %p3531_p5 = scmp.lt.s32.totalorder %s359_s19, %s359_s19 }
  0x34   : > { %p3524_p13 = scmp.ne.s32.totalorder %s359_s19, %s3523_s6  ;;  %p3532_p4 = scmp.lt.s32.totalorder %s3523_s6, %s3523_s6 }
  0x36   : > { %p3526_p0 = pnand %p3524_p13, %p4020_p8  ;;  %p3533_p2 = por %p3532_p4, %p3531_p5 }
  0x38   : > { %p3527_p3 = pneg %p3526_p0 }
  0x3a   : > { %p3534_p1 = pnand %p3533_p2, %p3527_p3 }
  0x3c   : > { %3537 = shalt.err (!%p3534_p1)
}
  0x3d   : > { %s4627_s9 = smov 64   ;;  %s4628_s11 = smov 4  }
  0x3e   : > { %3155 = dma.hbm_to_vmem [thread:$0]  (!%p4006_p6), %s4660_s1, 2048, %s359_s19, [#allocation10], %s4627_s9, %s4627_s9, %s4628_s11  }
  0x3f   : > { %s4662_s3 = sld [smem:[#allocation34_spill]] }
  0x45   : > { %s3538_s27 = scalar_lea.hbm %s4662_s3, 3072 }
  0x46   : > { %p3539_p1 = scmp.ne.s32.totalorder %s4662_s3, %s3538_s27  ;;  %p3545_p7 = scmp.lt.u32.totalorder %s3538_s27, %s4662_s3 }
  0x48   : > { %p3541_p2 = pnand %p3539_p1, %p4020_p8 }
  0x4a   : > { %p3542_p4 = pneg %p3541_p2 }
  0x4c   : > { %p3547_p9 = pnand %p3545_p7, %p3542_p4 }
  0x4e   : > { %3550 = shalt.err (!%p3547_p9)
}
  0x4f   : > { %s3551_s19 = scalar_lea.vmem %s4010_s10, 3072  ;;  %p3559_p13 = scmp.lt.s32.totalorder %s4010_s10, %s4010_s10 }
  0x50   : > { %p3552_p10 = scmp.ne.s32.totalorder %s4010_s10, %s3551_s19  ;;  %p3560_p0 = scmp.lt.s32.totalorder %s3551_s19, %s3551_s19 }
  0x52   : > { %p3554_p11 = pnand %p3552_p10, %p4020_p8  ;;  %p3561_p3 = por %p3560_p0, %p3559_p13 }
  0x54   : > { %p3555_p12 = pneg %p3554_p11 }
  0x56   : > { %p3562_p5 = pnand %p3561_p3, %p3555_p12 }
  0x58   : > { %3565 = shalt.err (!%p3562_p5)
}
  0x59   : > { %s4631_s17 = smov 192   ;;  %s3849_s0 = smov 12  }
  0x5a   : > { %3161 = dma.hbm_to_vmem [thread:$0]  (!%p4006_p6), %s4662_s3, 3072, %s4010_s10, [#allocation13], %s4631_s17, %s4631_s17, %s3849_s0  }
  0x5b   : > { %s3850_s7 = smov [#allocation15]   ;;  %s3851_s28 = smov [#allocation11]  }
  0x5c   : > { %s410_s12 = sshll.u32 %s3850_s7, 4  ;;  %s371_s14 = sshll.u32 %s3851_s28, 4  ;;  %s411_s12 = int_to_ptr.vmem [resolvable:$true] %s410_s12  ;;  %s372_s14 = int_to_ptr.vmem [resolvable:$true] %s371_s14 }
  0x5d   : > { %s4663_s5 = sld [smem:[#allocation36_spill]] }
  0x63   : > { %s3566_s9 = scalar_lea.hbm %s4663_s5, 3072 }
  0x64   : > { %p3567_p1 = scmp.ne.s32.totalorder %s4663_s5, %s3566_s9  ;;  %p3573_p7 = scmp.lt.u32.totalorder %s3566_s9, %s4663_s5 }
  0x66   : > { %p3569_p2 = pnand %p3567_p1, %p4020_p8 }
  0x68   : > { %p3570_p4 = pneg %p3569_p2 }
  0x6a   : > { %p3575_p9 = pnand %p3573_p7, %p3570_p4 }
  0x6c   : > { %3578 = shalt.err (!%p3575_p9)
}
  0x6d   : > { %s3579_s10 = scalar_lea.vmem %s411_s12, 3072  ;;  %p3587_p13 = scmp.lt.s32.totalorder %s411_s12, %s411_s12 }
  0x6e   : > { %p3580_p10 = scmp.ne.s32.totalorder %s411_s12, %s3579_s10  ;;  %p3588_p0 = scmp.lt.s32.totalorder %s3579_s10, %s3579_s10 }
  0x70   : > { %p3582_p11 = pnand %p3580_p10, %p4020_p8  ;;  %p3589_p3 = por %p3588_p0, %p3587_p13 }
  0x72   : > { %p3583_p12 = pneg %p3582_p11 }
  0x74   : > { %p3590_p5 = pnand %p3589_p3, %p3583_p12 }
  0x76   : > { %3593 = shalt.err (!%p3590_p5)
}
  0x77   : > { %3167 = dma.hbm_to_vmem [thread:$0]  (!%p4006_p6), %s4663_s5, 3072, %s411_s12, [#allocation16], %s4631_s17, %s4631_s17, %s3849_s0  }
  0x78   : > { %s4664_s2 = sld [smem:[#allocation33_spill]] }
  0x7e   : > { %s3594_s11 = scalar_lea.hbm %s4664_s2, 1024 }
  0x7f   : > { %p3595_p1 = scmp.ne.s32.totalorder %s4664_s2, %s3594_s11  ;;  %p3601_p7 = scmp.lt.u32.totalorder %s3594_s11, %s4664_s2 }
  0x81   : > { %p3597_p2 = pnand %p3595_p1, %p4020_p8 }
  0x83   : > { %p3598_p4 = pneg %p3597_p2 }
  0x85   : > { %p3603_p9 = pnand %p3601_p7, %p3598_p4 }
  0x87   : > { %3606 = shalt.err (!%p3603_p9)
}
  0x88   : > { %s3607_s6 = scalar_lea.vmem %s372_s14, 1024  ;;  %p3615_p13 = scmp.lt.s32.totalorder %s372_s14, %s372_s14 }
  0x89   : > { %p3608_p10 = scmp.ne.s32.totalorder %s372_s14, %s3607_s6  ;;  %p3616_p0 = scmp.lt.s32.totalorder %s3607_s6, %s3607_s6 }
  0x8b   : > { %p3610_p11 = pnand %p3608_p10, %p4020_p8  ;;  %p3617_p3 = por %p3616_p0, %p3615_p13 }
  0x8d   : > { %p3611_p12 = pneg %p3610_p11 }
  0x8f   : > { %p3618_p5 = pnand %p3617_p3, %p3611_p12 }
  0x91   : > { %3621 = shalt.err (!%p3618_p5)
}
  0x92   : > { %s4665_s12 = smov 4   ;;  %s4666_s19 = smov 64  }
  0x93   : > { %3158 = dma.hbm_to_vmem [thread:$0]  (!%p4006_p6), %s4664_s2, 1024, %s372_s14, [#allocation10], %s4666_s19, %s4666_s19, %s4665_s12  }
  0x94   : > { %s3852_s21 = smov [#allocation14]   ;;  %s3853_s9 = smov [#allocation17]  }
  0x95   : > { %s397_s22 = sshll.u32 %s3852_s21, 4  ;;  %s429_s11 = sshll.u32 %s3853_s9, 4  ;;  %s398_s22 = int_to_ptr.vmem [resolvable:$true] %s397_s22  ;;  %s430_s11 = int_to_ptr.vmem [resolvable:$true] %s429_s11 }
  0x96   : > { %s4667_s4 = sld [smem:[#allocation35_spill]] }
  0x9c   : > { %s3622_s7 = scalar_lea.hbm %s4667_s4, 3072 }
  0x9d   : > { %p3623_p1 = scmp.ne.s32.totalorder %s4667_s4, %s3622_s7  ;;  %p3629_p7 = scmp.lt.u32.totalorder %s3622_s7, %s4667_s4 }
  0x9f   : > { %p3625_p2 = pnand %p3623_p1, %p4020_p8 }
  0xa1   : > { %p3626_p4 = pneg %p3625_p2 }
  0xa3   : > { %p3631_p9 = pnand %p3629_p7, %p3626_p4 }
  0xa5   : > { %3634 = shalt.err (!%p3631_p9)
}
  0xa6   : > { %s3635_s14 = scalar_lea.vmem %s398_s22, 3072  ;;  %p3643_p13 = scmp.lt.s32.totalorder %s398_s22, %s398_s22 }
  0xa7   : > { %p3636_p10 = scmp.ne.s32.totalorder %s398_s22, %s3635_s14  ;;  %p3644_p0 = scmp.lt.s32.totalorder %s3635_s14, %s3635_s14 }
  0xa9   : > { %p3638_p11 = pnand %p3636_p10, %p4020_p8  ;;  %p3645_p3 = por %p3644_p0, %p3643_p13 }
  0xab   : > { %p3639_p12 = pneg %p3638_p11 }
  0xad   : > { %p3646_p5 = pnand %p3645_p3, %p3639_p12 }
  0xaf   : > { %3649 = shalt.err (!%p3646_p5)
}
  0xb0   : > { %s4668_s12 = smov 192   ;;  %s4669_s8 = sld [smem:[#allocation39_spill]] }
  0xb1   : > { %3164 = dma.hbm_to_vmem [thread:$0]  (!%p4006_p6), %s4667_s4, 3072, %s398_s22, [#allocation13], %s4668_s12, %s4668_s12, %s3849_s0  }
  0xb6   : > { %s3650_s9 = scalar_lea.hbm %s4669_s8, 2048 }
  0xb7   : > { %p3651_p1 = scmp.ne.s32.totalorder %s4669_s8, %s3650_s9  ;;  %p3657_p7 = scmp.lt.u32.totalorder %s3650_s9, %s4669_s8 }
  0xb9   : > { %p3653_p2 = pnand %p3651_p1, %p4020_p8 }
  0xbb   : > { %p3654_p4 = pneg %p3653_p2 }
  0xbd   : > { %p3659_p9 = pnand %p3657_p7, %p3654_p4 }
  0xbf   : > { %3662 = shalt.err (!%p3659_p9)
}
  0xc0   : > { %s3663_s6 = scalar_lea.vmem %s430_s11, 2048  ;;  %p3671_p13 = scmp.lt.s32.totalorder %s430_s11, %s430_s11 }
  0xc1   : > { %p3664_p10 = scmp.ne.s32.totalorder %s430_s11, %s3663_s6  ;;  %p3672_p0 = scmp.lt.s32.totalorder %s3663_s6, %s3663_s6 }
  0xc3   : > { %p3666_p11 = pnand %p3664_p10, %p4020_p8  ;;  %p3673_p3 = por %p3672_p0, %p3671_p13 }
  0xc5   : > { %p3667_p12 = pneg %p3666_p11 }
  0xc7   : > { %p3674_p5 = pnand %p3673_p3, %p3667_p12 }
  0xc9   : > { %3677 = shalt.err (!%p3674_p5)
}
  0xca   : > { %s4632_s0 = smov 128   ;;  %s4633_s18 = smov 8  }
  0xcb   : > { %3170 = dma.hbm_to_vmem [thread:$0]  (!%p4006_p6), %s4669_s8, 2048, %s430_s11, [#allocation16], %s4632_s0, %s4632_s0, %s4633_s18  }
  0xcc   : > { %s2778_s14 = sadd.s32 4294967294, %s3842_s13   ;;  %s4670_s12 = sld [smem:[#allocation25_spill]] }
  0xcd   : > { %s41_s17 = sadd.s32 1, %s3834_s29  ;;  %s4671_s19 = sld [smem:[#allocation24_spill]] }
  0xce   : > { %s44_s1 = sadd.s32 1, %s3838_s30  ;;  %p42_p8 = scmp.ge.s32.totalorder %s41_s17, 8 }
  0xcf   : > { %s51_s21 = sadd.s32 1, %s3822_s26  ;;  %p58_p1 = scmp.ne.s32.totalorder %s3822_s26, %s3818_s25 }
  0xd0   : > { %p59_p2 = scmp.eq.s32.totalorder %s3842_s13, 0  ;;  %s4717_s17 = smov (%p42_p8, %s41_s17), 0 }
  0xd1   : > { %s4672_s20 = sld [smem:[#allocation28_spill]]  ;;  %s4719_s1 = smov (!%p42_p8, %s44_s1), %s3838_s30 }
  0xd2   : > { %p4159_p4 = por %p59_p2, %p58_p1  ;;  %p64_p6 = scmp.ne.s32.totalorder %s3818_s25, %s3814_s24 }
  0xd3   : > { %p46_p7 = scmp.ge.s32.totalorder %s4719_s1, 2  ;;  %s263_s9 = ssub.s32 %s3834_s29, %s4717_s17 }
  0xd4   : > { %p4674_p9 = scmp.ne.s32.totalorder %s4654_s15, 0  ;;  %s268_s16 = sadd.s32 1, %s3810_s23 }
  0xd5   : > { %s4721_s1 = smov (%p46_p7, %s4719_s1), 0  ;;  %p278_p11 = scmp.ne.s32.totalorder %s3810_s23, %s4670_s12 }
  0xd6   : > { %p4169_p10 = por %p4674_p9, %p64_p6  ;;  %4676 = sst [smem:[#allocation30_spill]] %s4721_s1 }
  0xd7   : > { %p284_p12 = scmp.ne.s32.totalorder %s4670_s12, %s4671_s19  ;;  %s48_s7 = ssub.s32 %s3838_s30, %s4721_s1 }
  0xd8   : > { %p285_p13 = scmp.eq.s32.totalorder %s2778_s14, 15  ;;  %p49_p0 = scmp.eq.s32.totalorder %s48_s7, 0 }
  0xd9   : > { %s265_s24 = sor.u32 %s263_s9, %s48_s7  ;;  %p4677_p5 = scmp.ne.s32.totalorder %s4672_s20, 0 }
  0xda   : > { %p266_p3 = scmp.eq.s32.totalorder %s265_s24, 0  ;;  %p4194_p1 = por %p285_p13, %p284_p12 }
  0xdb   : > { %p4184_p8 = por %p4677_p5, %p278_p11  ;;  %p3185_p2 = scmp.lt.s32.totalorder %s3842_s13, 16 }
  0xdc   : > { %s4189_s6 = scalar_select %p49_p0, %s3822_s26, %s51_s21  }
  0xdd   : > { %s4678_s28 = scalar_select %p4184_p8, 1, 0 }
  0xde   : > { %s4192_s22 = scalar_select %p266_p3, %s3810_s23, %s268_s16  }
  0xdf   : > { %s4679_s10 = scalar_select %p4194_p1, 1, 0 }
  0xe0   : > { %s446_s12 = sand.u32 1, %s3822_s26   ;;  %s2951_s19 = sshll.u32 %s3838_s30, 10 }
  0xe1   : > { %s2787_s14 = sshll.u32 %s446_s12, 6  ;;  %s4680_s7 = sld [smem:[#allocation31_spill]] }
  0xe2   : > { %s450_s21 = scalar_lea.vmem [#allocation6], %s2787_s14  ;;  %p4208_p6 = pnand %p3185_p2, %p4159_p4 }
  0xe3   : > { %s457_s16 = sshll.u32 %s450_s21, 4  ;;  %s4214_s18 = scalar_lea.sflag [#allocation7], %s446_s12  ;;  %s4212_s16 = int_to_ptr.vmem [resolvable:$true] %s457_s16 }
  0xe4   : > { %p3680_p9 = pneg %p4208_p6 }
  0xe7   : > { %s4204_s20 = scalar_lea.hbm %s4680_s7, %s2951_s19  ;;  %s3683_s14 = scalar_lea.hbm %s4680_s7, 2048 }
  0xe8   : > { %s3678_s0 = scalar_lea.hbm %s4204_s20, 1024  ;;  %p3684_p4 = scmp.lt.u32.totalorder %s4204_s20, %s4680_s7 }
  0xe9   : > { %p3679_p7 = scmp.ne.s32.totalorder %s4204_s20, %s3678_s0  ;;  %p3685_p13 = scmp.lt.u32.totalorder %s3683_s14, %s3678_s0 }
  0xea   : > { %p3687_p3 = scmp.lt.u32.totalorder %s3678_s0, %s4204_s20 }
  0xeb   : > { %p3681_p11 = pnand %p3680_p9, %p3679_p7  ;;  %p3686_p0 = por %p3685_p13, %p3684_p4 }
  0xed   : > { %p3682_p12 = pneg %p3681_p11  ;;  %p3688_p5 = por %p3687_p3, %p3686_p0 }
  0xef   : > { %p3689_p2 = pnand %p3688_p5, %p3682_p12 }
  0xf1   : > { %3692 = shalt.err (!%p3689_p2)
}
  0xf2   : > { %s3693_s12 = scalar_lea.vmem %s4212_s16, 1024  ;;  %s3856_s19 = smov [#allocation6]  }
  0xf3   : > { %p3694_p7 = scmp.ne.s32.totalorder %s4212_s16, %s3693_s12  ;;  %s3698_s11 = sshll.u32 %s3856_s19, 4  ;;  %s3699_s11 = int_to_ptr.vmem [resolvable:$false] %s3698_s11 }
  0xf4   : > { %s3700_s9 = scalar_lea.vmem %s3699_s11, 2048  ;;  %p3701_p8 = scmp.lt.s32.totalorder %s4212_s16, %s3699_s11 }
  0xf5   : > { %p3696_p11 = pnand %p3694_p7, %p3680_p9  ;;  %p3702_p4 = scmp.lt.s32.totalorder %s3700_s9, %s3693_s12 }
  0xf7   : > { %p3697_p1 = pneg %p3696_p11  ;;  %p3703_p13 = por %p3702_p4, %p3701_p8 }
  0xf9   : > { %p3704_p0 = pnand %p3703_p13, %p3697_p1 }
  0xfb   : > { %3707 = shalt.err (!%p3704_p0)
}
  0xfc   : > { %s4682_s0 = smov 8   ;;  %s4683_s14 = smov 128  }
  0xfd   : > { %3174 = dma.hbm_to_vmem [thread:$0]  (!%p4208_p6), %s4204_s20, 1024, %s4212_s16, %s4214_s18, %s4683_s14, %s4683_s14, %s4682_s0  }
  0xfe   : > { %s4684_s21 = sld [smem:[#allocation29_spill]] }
 0x104   : > { %p4685_p9 = scmp.ne.s32.totalorder %s4684_s21, 0 }
 0x105   : > { %s471_s19 = sand.u32 (!%p4685_p9), 1, %s3818_s25  }
 0x106   : > { %469 = sbr.rel (%p4685_p9) target bundleno = 2990 (0xbae), region = 60  ;;  %s2791_s11 = sshll.u32 (!%p4685_p9), %s471_s19, 6 }
 0x107   : > { %s472_s12 = scalar_lea.sflag (!%p4685_p9), [#allocation7], %s471_s19  ;;  %s4248_s9 = scalar_lea.vmem (!%p4685_p9), [#allocation6], %s2791_s11 }
 0x10d   : > { %3781 = dma.done.wait (%p4169_p10), %s472_s12, 1024  }
 0x10e   : > { %3783 = vsyncadd (%p4169_p10), %s472_s12, 4294966272  ;;  %p4686_p8 = scmp.ne.s32.totalorder %s4654_s15, 0 }
 0x110   : > { %3785 = dma.done.wait (%p4686_p8), [#allocation10], 3072  }
 0x111   : > { %3787 = vsyncadd (%p4686_p8), [#allocation10], 4294964224 }
 0x112   : > { %3789 = dma.done.wait (%p4686_p8), [#allocation13], 6144  }
 0x113   : > { %3791 = vsyncadd (%p4686_p8), [#allocation13], 4294961152 }
 0x114   : > { %3793 = dma.done.wait (%p4686_p8), [#allocation16], 5120  }
 0x115   : > { %3795 = vsyncadd (%p4686_p8), [#allocation16], 4294962176  ;;  %s4687_s18 = sld [smem:[#allocation25_spill]]  ;;  %s4688_s27 = sld [smem:[#allocation26_spill]] }
 0x116   : > { %s4689_s20 = sld [smem:[#allocation27_spill]]  ;;  %s4690_s2 = sld [smem:[#allocation43_spill]] }
 0x117   : > { %s4691_s7 = sld [smem:[#allocation42_spill]] }
 0x11b   : > { %s533_s16 = sand.u32 1, %s4687_s18   ;;  %p553_p10 = scmp.lt.s32.totalorder %s4688_s27, 7 }
 0x11c   : > { %s2798_s24 = sshll.u32 %s533_s16, 4  ;;  %p555_p1 = scmp.lt.s32.totalorder %s4689_s20, 1 }
 0x11d   : > { %s554_s0 = scalar_select %p553_p10, %s4688_s27, 7 }
 0x11e   : > { %s4723_s20 = smov (!%p555_p1, %s4689_s20), 1  ;;  %s4283_s1 = scalar_lea.vmem [#allocation18], %s2798_s24 }
 0x11f   : > { %s2799_s14 = sshll.u32 %s554_s0, 1  ;;  %s2801_s19 = sshll.u32 %s4723_s20, 3 }
 0x120   : > { %s558_s21 = sadd.s32 %s2799_s14, %s4723_s20  ;;  %s4276_s3 = scalar_lea.vmem %s4690_s2, %s2801_s19 }
 0x121   : > { %s2800_s11 = sshll.u32 %s558_s21, 3  ;;  %p2802_p6 = scmp.ne.s32.totalorder %s4688_s27, 0 }
 0x122   : > { %s4281_s8 = scalar_lea.vmem %s4691_s7, %s2800_s11  ;;  %vm575_vm0 = vcmask (!%p2802_p6), 7168   ;;  %v3857_v0 = vmov (!%p2802_p6), 0.0   ;;  %v3302_v1 = vld [vmem:[#allocation9 + $0x40] sm:$0xff] (!%p2802_p6)   ;;  %v3858_v3 = vmov (!%p2802_p6), 0.0|0.0   ;;  %v3304_v4 = vld [vmem:[#allocation9 + $0x48] sm:$0xff] (!%p2802_p6)   ;;  %v3306_v6 = vld [vmem:[#allocation9 + $0x50] sm:$0xff] (!%p2802_p6)   ;;  %v577_v15 = vlaneseq (!%p2802_p6) }
 0x123   : > { %569 = sbr.rel (%p2802_p6) target bundleno = 539 (0x21b), region = 92  ;;  %570 = vst [vmem:[%s4283_s1] sm:$0xff] (!%p2802_p6), %v3857_v0  ;;  %571 = vst [vmem:[%s4283_s1 + $0x8] sm:$0xff] (!%p2802_p6), %v3857_v0  ;;  %v3303_v2 = vld [vmem:[#allocation9] sm:$0xff] (!%p2802_p6)   ;;  %748 = vmatprep.mubr.bf16.mxu0 (!%p2802_p6), %v3858_v3  ;;  %2952 = vmatprep.subr.bf16.mxu0 (!%p2802_p6), %v3302_v1  ;;  %v3305_v5 = vld [vmem:[#allocation9 + $0x8] sm:$0xff] (!%p2802_p6)   ;;  %v3859_v20 = vmov (!%p2802_p6), 1.0|1.0  }
 0x124   : > { %572 = vst [vmem:[%s4281_s8] sm:$0xff] (!%p2802_p6), %v3857_v0  ;;  %573 = vst [vmem:[#allocation2] sm:$0xff] (!%p2802_p6), %v3857_v0  ;;  %2953 = vmatpush3.bf16.msra.mxu0 (!%p2802_p6), %v3303_v2  ;;  %v3307_v7 = vld [vmem:[#allocation9 + $0x10] sm:$0xff] (!%p2802_p6)   ;;  %v3308_v8 = vld [vmem:[#allocation9 + $0x58] sm:$0xff] (!%p2802_p6)   ;;  %v578_v18 = vand.u32 (!%p2802_p6), 127, %v577_v15 }
 0x125   : > { %574 = vst [vmem:[#allocation4] sm:$0xff] (!%p2802_p6), %v3857_v0  ;;  %576 = vst.msk [vmem:[#allocation5] sm:$0xff] (!%p2802_p6), %vm575_vm0, %v3857_v0  ;;  %2954 = vmatprep.subr.bf16.mxu0 (!%p2802_p6), %v3304_v4  ;;  %v3309_v9 = vld [vmem:[#allocation9 + $0x18] sm:$0xff] (!%p2802_p6)   ;;  %v3310_v10 = vld [vmem:[#allocation9 + $0x60] sm:$0xff] (!%p2802_p6)  }
 0x126   : > { %v3311_v11 = vld [vmem:[#allocation9 + $0x20] sm:$0xff] (!%p2802_p6)   ;;  %v3312_v12 = vld [vmem:[#allocation9 + $0x68] sm:$0xff] (!%p2802_p6)   ;;  %v3314_v14 = vld [vmem:[#allocation9 + $0x70] sm:$0xff] (!%p2802_p6)   ;;  %vm580_vm1 = vcmp.eq.s32.totalorder (!%p2802_p6), %v578_v18, 1 }
 0x127   : > { %v3313_v13 = vld [vmem:[#allocation9 + $0x28] sm:$0xff] (!%p2802_p6)   ;;  %v3315_v16 = vld [vmem:[#allocation9 + $0x30] sm:$0xff] (!%p2802_p6)   ;;  %v3316_v17 = vld [vmem:[#allocation9 + $0x78] sm:$0xff] (!%p2802_p6)  }
 0x128   : > { %2955 = vmatpush3.bf16.msra.mxu0 (!%p2802_p6), %v3305_v5  ;;  %v3317_v19 = vld [vmem:[#allocation9 + $0x38] sm:$0xff] (!%p2802_p6)   ;;  %vm2820_vm2 = vmpackc.low (!%p2802_p6), %vm580_vm1, %vm580_vm1 }
 0x129   : > { %2956 = vmatprep.subr.bf16.mxu0 (!%p2802_p6), %v3306_v6 }
 0x12c   : > { %2957 = vmatpush3.bf16.msra.mxu0 %v3307_v7 }
 0x12d   : > { %2958 = vmatprep.subr.bf16.mxu0 %v3308_v8 }
 0x130   : > { %2959 = vmatpush3.bf16.msra.mxu0 %v3309_v9 }
 0x131   : > { %2960 = vmatprep.subr.bf16.mxu0 %v3310_v10 }
 0x134   : > { %2961 = vmatpush3.bf16.msra.mxu0 %v3311_v11 }
 0x135   : > { %2962 = vmatprep.subr.bf16.mxu0 %v3312_v12 }
 0x138   : > { %2963 = vmatpush3.bf16.msra.mxu0 %v3313_v13 }
 0x139   : > { %2964 = vmatprep.subr.bf16.mxu0 %v3314_v14 }
 0x13c   : > { %2965 = vmatpush3.bf16.msra.mxu0 %v3315_v16 }
 0x13d   : > { %2966 = vmatprep.subr.bf16.mxu0 %v3316_v17 }
 0x140   : > { %2967 = vmatpush3.bf16.msra.mxu0 %v3317_v19 }
 0x143   : > { %2821 = vmatmul.mubr.msk.bf16.vlgmr.msra.gmra.mrb[0].mxu0 %vm2820_vm2, %v3859_v20 }
 0x216   : > { %v2968_v21 = vpop.f32.mrb[0].mxu0 }
 0x217   : > { %v2969_v22 = vpop.f32.mrb[1].mxu0 }
 0x218   : > { %v2970_v23 = vadd.f32 %v2969_v22, %v2968_v21  ;;  %v2971_v24 = vpop.f32.mrb[2].mxu0 }
 0x219   : > { %v2972_v25 = vpop.f32.mrb[3].mxu0 }
 0x21a   : > { %756 = vst [vmem:[#allocation3] sm:$0xff] %v2970_v23 }
 0x21b PF: > { %s4692_s2 = sld [smem:[#allocation26_spill]] }
 0x221   : > { %p2822_p12 = scmp.le.s32.totalorder %s4692_s2, 0 }
 0x222   : > { %v3320_v26 = vld [vmem:[#allocation11] sm:$0xff] (!%p2822_p12)   ;;  %v3860_v27 = vmov (!%p2822_p12), 0.0   ;;  %v3321_v28 = vld [vmem:[#allocation11 + $0x8] sm:$0xff] (!%p2822_p12)   ;;  %vm3861_vm3 = vmmov (!%p2822_p12), 0   ;;  %v3322_v29 = vld [vmem:[#allocation11 + $0x10] sm:$0xff] (!%p2822_p12)   ;;  %v881_v39 = vlaneseq (!%p2822_p12)  ;;  %vm1032_vm4 = vcmask (!%p2822_p12), 1041409  }
 0x223   : > { %760 = sbr.rel (%p2822_p12) target bundleno = 2810 (0xafa), region = 96  ;;  %3032 = vmatprep.subr.bf16.mxu0 (!%p2822_p12), %v3860_v27  ;;  %3048 = vmatprep.mubr.msk.bf16.mxu0 (!%p2822_p12), %vm3861_vm3, %v3860_v27  ;;  %v3323_v30 = vld [vmem:[#allocation11 + $0x18] sm:$0xff] (!%p2822_p12)   ;;  %v3324_v31 = vld [vmem:[#allocation11 + $0x20] sm:$0xff] (!%p2822_p12)   ;;  %v3325_v32 = vld [vmem:[#allocation11 + $0x28] sm:$0xff] (!%p2822_p12)   ;;  %v3862_v37 = vmov (!%p2822_p12), 1966171168  }
 0x224   : > { %3033 = vmatpush3.bf16.msra.mxu0 (!%p2822_p12), %v3320_v26  ;;  %v3326_v33 = vld [vmem:[#allocation11 + $0x30] sm:$0xff] (!%p2822_p12)   ;;  %v3327_v34 = vld [vmem:[#allocation11 + $0x38] sm:$0xff] (!%p2822_p12)   ;;  %v761_v35 = vld [vmem:[#allocation2] sm:$0xff] (!%p2822_p12)  ;;  %v879_v38 = vunpack.c.l.s4 (!%p2822_p12), %v3862_v37  ;;  %v4306_v41 = vshrl.u32 (!%p2822_p12), %v881_v39, 7  ;;  %v4352_v21 = vand.u32 (!%p2822_p12), 127, %v881_v39  ;;  %vm1034_vm5 = vcmask (!%p2822_p12), 1042434  }
 0x225   : > { %3034 = vmatprep.subr.bf16.mxu0 (!%p2822_p12), %v3860_v27  ;;  %v4300_v36 = vpack.c.bf16 (!%p2822_p12), %v761_v35, %v761_v35  ;;  %v4313_v53 = vld [vmem:[%s4248_s9] sm:$0xff] (!%p2822_p12)  ;;  %v4317_v58 = vld [vmem:[%s4248_s9 + $0x10] sm:$0xff] (!%p2822_p12)  ;;  %v4323_v0 = vld [vmem:[%s4248_s9 + $0x8] sm:$0xff] (!%p2822_p12)  ;;  %vm1036_vm6 = vcmask (!%p2822_p12), 1043459   ;;  %vm1038_vm7 = vcmask (!%p2822_p12), 1044484   ;;  %vm1040_vm8 = vcmask (!%p2822_p12), 1045509  }
 0x226   : > { %v880_v40 = vunpack.c.0.s8 (!%p2822_p12), %v879_v38  ;;  %v4310_v47 = vsub.s32 (!%p2822_p12), 0, %v4306_v41  ;;  %v4328_v4 = vld [vmem:[%s4248_s9 + $0x18] sm:$0xff] (!%p2822_p12)  ;;  %v4333_v8 = vld [vmem:[%s4248_s9 + $0x20] sm:$0xff] (!%p2822_p12)  ;;  %v4338_v12 = vld [vmem:[%s4248_s9 + $0x28] sm:$0xff] (!%p2822_p12)  ;;  %v4356_v23 = vsub.s32 (!%p2822_p12), %v4352_v21, %v4306_v41  ;;  %vm1042_vm9 = vcmask (!%p2822_p12), 1046534   ;;  %s4693_s7 = sld [smem:[#allocation38_spill]] (!%p2822_p12) }
 0x227   : > { %v4343_v15 = vld [vmem:[%s4248_s9 + $0x30] sm:$0xff] (!%p2822_p12)  ;;  %v4348_v18 = vld [vmem:[%s4248_s9 + $0x38] sm:$0xff] (!%p2822_p12)  ;;  %vm1044_vm10 = vcmask (!%p2822_p12), 1047559   ;;  %vm1047_vm11 = vcmask (!%p2822_p12), 64512   ;;  %s4694_s27 = sld [smem:[#allocation37_spill]] (!%p2822_p12)  ;;  %s4695_s0 = sld [smem:[#allocation40_spill]] (!%p2822_p12) }
 0x228   : > { %3035 = vmatpush3.bf16.msra.mxu0 (!%p2822_p12), %v3321_v28  ;;  %v883_v42 = vsub.s32 (!%p2822_p12), %v880_v40, %v4306_v41 }
 0x229   : > { %3036 = vmatprep.subr.bf16.mxu0 (!%p2822_p12), %v3860_v27 }
 0x22c   : > { %3037 = vmatpush3.bf16.msra.mxu0 %v3322_v29 }
 0x22d   : > { %3038 = vmatprep.subr.bf16.mxu0 %v3860_v27 }
 0x230   : > { %3039 = vmatpush3.bf16.msra.mxu0 %v3323_v30 }
 0x231   : > { %3040 = vmatprep.subr.bf16.mxu0 %v3860_v27 }
 0x234   : > { %3041 = vmatpush3.bf16.msra.mxu0 %v3324_v31 }
 0x235   : > { %3042 = vmatprep.subr.bf16.mxu0 %v3860_v27 }
 0x238   : > { %3043 = vmatpush3.bf16.msra.mxu0 %v3325_v32 }
 0x239   : > { %3044 = vmatprep.subr.bf16.mxu0 %v3860_v27 }
 0x23c   : > { %3045 = vmatpush3.bf16.msra.mxu0 %v3326_v33 }
 0x23d   : > { %3046 = vmatprep.subr.bf16.mxu0 %v3860_v27 }
 0x240   : > { %3047 = vmatpush3.bf16.msra.mxu0 %v3327_v34 }
 0x241   : > { %3052 = vmatprep.subr.bf16.mxu0 %v3860_v27 }
 0x243   : > { %3049 = vmatmul.mubr.bf16.vlgmr.msra.gmra.mrb[0].mxu0 %v4300_v36 }
 0x244   : > { %3068 = vmatprep.mubr.msk.bf16.mxu0 %vm3861_vm3, %v3860_v27 }
 0x316   : > { %v870_v43 = vpop.f32.mrb[0].mxu0 }
 0x317   : > { %v877_v44 = vcombine.high %v870_v43, %v870_v43  ;;  %v884_v45 = vrot.slane %v870_v43, %v883_v42  ;;  %v3050_v46 = vpop.f32.mrb[1].mxu0 }
 0x318   : > { %v873_v48 = vpop.f32.mrb[2].mxu0 }
 0x319   : > { %v891_v49 = vrot.slane %v877_v44, %v883_v42  ;;  %v892_v50 = vcombine.high %v884_v45, %v884_v45  ;;  %v900_v51 = vrot.slane %v884_v45, %v883_v42  ;;  %v3051_v52 = vpop.f32.mrb[3].mxu0 }
 0x31a   : > { %v4378_v52 = vsub.s32 1, %v4306_v41 }
 0x31b   : > { %v893_v54 = vcombine.high %v891_v49, %v891_v49  ;;  %v929_v55 = vrot.slane %v900_v51, %v4310_v47  ;;  %v922_v56 = vcombine.high %v900_v51, %v900_v51  ;;  %v914_v57 = vrot.slane %v892_v50, %v883_v42 }
 0x31c   : > { %v907_v59 = vrot.slane %v891_v49, %v883_v42  ;;  %v3863_v51 = vmov 0  }
 0x31d   : > { %v966_v60 = vmul.f32 %v929_v55, %v4313_v53  ;;  %v937_v61 = vrot.slane %v922_v56, %v4310_v47  ;;  %v933_v62 = vrot.slane %v914_v57, %v4310_v47  ;;  %v924_v63 = vcombine.high %v914_v57, %v914_v57  ;;  %3319 = vset.pattern.permute.xlu0 %v3863_v51 }
 0x31e   : > { %v921_v3 = vrot.slane %v893_v54, %v883_v42  ;;  %v945_v6 = vrot.slane %v907_v59, %v4310_v47  ;;  %v923_v7 = vcombine.high %v907_v59, %v907_v59  ;;  %3318 = vset.pattern.permute.xlu1 %v3863_v51  ;;  %1602 = vmatprep.mubr.bf16.mxu1 %v3863_v51  ;;  %v4381_v54 = vsub.s32 2, %v4306_v41 }
 0x31f   : > { %974 = vadd.xlane.f32.xlu0 %v966_v60  ;;  %v968_v1 = vmul.f32 %v937_v61, %v4317_v58  ;;  %v941_v2 = vrot.slane %v924_v63, %v4310_v47  ;;  %v967_v5 = vmul.f32 %v933_v62, %v4323_v0  ;;  %v1066_v55 = vsub.s32 3, %v4306_v41 }
 0x320   : > { %v949_v10 = vrot.slane %v921_v3, %v4310_v47  ;;  %v925_v11 = vcombine.high %v921_v3, %v921_v3  ;;  %v970_v13 = vmul.f32 %v945_v6, %v4333_v8  ;;  %v953_v14 = vrot.slane %v923_v7, %v4310_v47 }
 0x321   : > { %978 = vadd.xlane.f32.xlu1 %v968_v1  ;;  %v969_v9 = vmul.f32 %v941_v2, %v4328_v4  ;;  %v1070_v61 = vsub.s32 4, %v4306_v41  ;;  %v1074_v6 = vsub.s32 5, %v4306_v41 }
 0x322   : > { %v971_v16 = vmul.f32 %v949_v10, %v4338_v12  ;;  %v957_v17 = vrot.slane %v925_v11, %v4310_v47  ;;  %v972_v19 = vmul.f32 %v953_v14, %v4343_v15  ;;  %v1078_v11 = vsub.s32 6, %v4306_v41 }
 0x323   : > { %976 = vadd.xlane.f32.xlu0 %v967_v5 }
 0x324   : > { %v973_v20 = vmul.f32 %v957_v17, %v4348_v18  ;;  %v1082_v17 = vsub.s32 7, %v4306_v41 }
 0x325   : > { %980 = vadd.xlane.f32.xlu1 %v969_v9 }
 0x327   : > { %982 = vadd.xlane.f32.xlu0 %v970_v13 }
 0x329   : > { %984 = vadd.xlane.f32.xlu1 %v971_v16 }
 0x32b   : > { %986 = vadd.xlane.f32.xlu0 %v972_v19 }
 0x32d   : > { %988 = vadd.xlane.f32.xlu1 %v973_v20 }
 0x3ac   : > { %v975_v22 = vpop.xlane.xlu0 %974 }
 0x3ad   : > { %v1003_v26 = vrot.slane %v975_v22, %v4356_v23 }
 0x3ae   : > { %v979_v24 = vpop.xlane.xlu1 %978 }
 0x3af   : > { %v1011_v29 = vrot.slane %v979_v24, %v4356_v23 }
 0x3b0   : > { %v977_v25 = vpop.xlane.xlu0 %976 }
 0x3b1   : > { %v1007_v28 = vrot.slane %v977_v25, %v4356_v23 }
 0x3b2   : > { %v981_v30 = vpop.xlane.xlu1 %980 }
 0x3b3   : > { %v1033_v31 = vsel %vm1032_vm4, %v1007_v28, %v1003_v26  ;;  %v1015_v32 = vrot.slane %v981_v30, %v4356_v23 }
 0x3b4   : > { %v1035_v33 = vsel %vm1034_vm5, %v1011_v29, %v1033_v31  ;;  %v983_v34 = vpop.xlane.xlu0 %982 }
 0x3b5   : > { %v1037_v35 = vsel %vm1036_vm6, %v1015_v32, %v1035_v33  ;;  %v1019_v37 = vrot.slane %v983_v34, %v4356_v23 }
 0x3b6   : > { %v985_v38 = vpop.xlane.xlu1 %984 }
 0x3b7   : > { %v1039_v39 = vsel %vm1038_vm7, %v1019_v37, %v1037_v35  ;;  %v1023_v40 = vrot.slane %v985_v38, %v4356_v23 }
 0x3b8   : > { %v987_v42 = vpop.xlane.xlu0 %986 }
 0x3b9   : > { %v1027_v43 = vrot.slane %v987_v42, %v4356_v23  ;;  %v1041_v44 = vsel %vm1040_vm8, %v1023_v40, %v1039_v39 }
 0x3ba   : > { %v989_v45 = vpop.xlane.xlu1 %988 }
 0x3bb   : > { %v1031_v46 = vrot.slane %v989_v45, %v4356_v23  ;;  %v1043_v48 = vsel %vm1042_vm9, %v1027_v43, %v1041_v44 }
 0x3bd   : > { %v1045_v49 = vsel %vm1044_vm10, %v1031_v46, %v1043_v48 }
 0x3be   : > { %v1048_v50 = vsel %vm1047_vm11, %v1045_v49, -inf }
 0x3bf   : > { %1049 = vmax.xlane.f32.xlu0 %v1048_v50 }
 0x44c   : > { %v1050_v56 = vpop.xlane.xlu0 %1049 }
 0x44d   : > { %v1055_v57 = vrot.slane %v1050_v56, %v4310_v47  ;;  %v1059_v59 = vrot.slane %v1050_v56, %v4378_v52  ;;  %v1063_v60 = vrot.slane %v1050_v56, %v4381_v54  ;;  %v1067_v62 = vrot.slane %v1050_v56, %v1066_v55 }
 0x44e   : > { %v1071_v7 = vrot.slane %v1050_v56, %v1070_v61  ;;  %v1075_v13 = vrot.slane %v1050_v56, %v1074_v6  ;;  %v1079_v19 = vrot.slane %v1050_v56, %v1078_v11  ;;  %v1083_v26 = vrot.slane %v1050_v56, %v1082_v17 }
 0x44f   : > { %v1092_v63 = vsub.f32 %v975_v22, %v1055_v57  ;;  %v1093_v1 = vsub.f32 %v977_v25, %v1059_v59  ;;  %v1094_v2 = vsub.f32 %v979_v24, %v1063_v60  ;;  %v1095_v9 = vsub.f32 %v981_v30, %v1067_v62 }
 0x450   : > { %v1096_v14 = vsub.f32 %v983_v34, %v1071_v7  ;;  %v1097_v20 = vsub.f32 %v985_v38, %v1075_v13  ;;  %v1098_v28 = vsub.f32 %v987_v42, %v1079_v19  ;;  %v1099_v31 = vsub.f32 %v989_v45, %v1083_v26 }
 0x451   : > { %v1100_v3 = vmul.f32 1.442695, %v1092_v63  ;;  %v1102_v5 = vmul.f32 1.442695, %v1093_v1  ;;  %v1104_v10 = vmul.f32 1.442695, %v1094_v2 }
 0x452   : > { %v1106_v16 = vmul.f32 1.442695, %v1095_v9  ;;  %v1108_v22 = vmul.f32 1.442695, %v1096_v14  ;;  %v1110_v29 = vmul.f32 1.442695, %v1097_v20 }
 0x453   : > { %3464 = vpow2.f32 %v1100_v3  ;;  %v1112_v32 = vmul.f32 1.442695, %v1098_v28  ;;  %v1114_v34 = vmul.f32 1.442695, %v1099_v31 }
 0x454   : > { %3466 = vpow2.f32 %v1102_v5 }
 0x455   : > { %3468 = vpow2.f32 %v1104_v10 }
 0x456   : > { %3470 = vpow2.f32 %v1106_v16 }
 0x457   : > { %3472 = vpow2.f32 %v1108_v22 }
 0x458   : > { %3474 = vpow2.f32 %v1110_v29 }
 0x459   : > { %3476 = vpow2.f32 %v1112_v32 }
 0x45a   : > { %3478 = vpow2.f32 %v1114_v34 }
 0x45d   : > { %v3465_v24 = vpop.eup %3464 }
 0x45e   : > { %v4399_v25 = vpop.eup %3466  ;;  %1125 = vperm.xlu1 %3318, %v3465_v24  }
 0x45f   : > { %1128 = vperm.xlu0 %3319, %v4399_v25   ;;  %v4404_v30 = vpop.eup %3468 }
 0x460   : > { %v4407_v33 = vpop.eup %3470 }
 0x461   : > { %v4410_v35 = vpop.eup %3472 }
 0x462   : > { %1131 = vperm.xlu1 %3318, %v4404_v30   ;;  %v4413_v37 = vpop.eup %3474 }
 0x463   : > { %v4416_v38 = vpop.eup %3476 }
 0x464   : > { %v4419_v39 = vpop.eup %3478 }
 0x466   : > { %1134 = vperm.xlu1 %3318, %v4407_v33  }
 0x46a   : > { %1137 = vperm.xlu1 %3318, %v4410_v35  }
 0x46e   : > { %1140 = vperm.xlu1 %3318, %v4413_v37  }
 0x472   : > { %1143 = vperm.xlu1 %3318, %v4416_v38  }
 0x476   : > { %1146 = vperm.xlu1 %3318, %v4419_v39  }
 0x4dd   : > { %v1126_v40 = vpop.permute.xlu1 %1125 }
 0x4de   : > { %v1129_v45 = vpop.permute.xlu0 %1128  ;;  %v1151_v49 = vrot.slane %v1126_v40, %v4356_v23 }
 0x4df   : > { %v1155_v48 = vrot.slane %v1129_v45, %v4356_v23 }
 0x4e1   : > { %v1132_v42 = vpop.permute.xlu1 %1131  ;;  %v1180_v60 = vsel %vm1032_vm4, %v1155_v48, %v1151_v49  ;;  %v3330_v48 = vld [vmem:[#allocation14] ss:$12 sps:$4 sm:$0xff]   ;;  %v3331_v49 = vld [vmem:[#allocation14 + $0x8] ss:$12 sps:$4 sm:$0xff]  }
 0x4e2   : > { %v1159_v50 = vrot.slane %v1132_v42, %v4356_v23  ;;  %3053 = vmatpush3.bf16.msra.mxu0 %v3331_v49 }
 0x4e3   : > { %3054 = vmatprep.subr.bf16.mxu0 %v3860_v27 }
 0x4e4   : > { %v1181_v63 = vsel %vm1034_vm5, %v1159_v50, %v1180_v60  ;;  %v3335_v50 = vld [vmem:[#allocation14 + $0x20] ss:$12 sps:$4 sm:$0xff]   ;;  %v3344_v60 = vld [vmem:[#allocation14 + $0x64] ss:$12 sps:$4 sm:$0xff]  }
 0x4e5   : > { %v1135_v43 = vpop.permute.xlu1 %1134 }
 0x4e6   : > { %v1163_v56 = vrot.slane %v1135_v43, %v4356_v23  ;;  %3055 = vmatpush3.bf16.msra.mxu0 %v3335_v50 }
 0x4e7   : > { %3056 = vmatprep.subr.bf16.mxu0 %v3860_v27 }
 0x4e8   : > { %v1182_v2 = vsel %vm1036_vm6, %v1163_v56, %v1181_v63  ;;  %v3339_v56 = vld [vmem:[#allocation14 + $0x38] ss:$12 sps:$4 sm:$0xff]   ;;  %v3347_v63 = vld [vmem:[#allocation14 + $0x68] ss:$12 sps:$4 sm:$0xff]  }
 0x4e9   : > { %v1138_v44 = vpop.permute.xlu1 %1137 }
 0x4ea   : > { %v1167_v57 = vrot.slane %v1138_v44, %v4356_v23  ;;  %3057 = vmatpush3.bf16.msra.mxu0 %v3339_v56 }
 0x4eb   : > { %3058 = vmatprep.subr.bf16.mxu0 %v3860_v27 }
 0x4ec   : > { %v1183_v3 = vsel %vm1038_vm7, %v1167_v57, %v1182_v2  ;;  %v3340_v57 = vld [vmem:[#allocation14 + $0x4c] ss:$12 sps:$4 sm:$0xff]  }
 0x4ed   : > { %v1141_v46 = vpop.permute.xlu1 %1140  ;;  %v3350_v2 = vld [vmem:[#allocation14 + $0x78] ss:$12 sps:$4 sm:$0xff]  }
 0x4ee   : > { %v1171_v62 = vrot.slane %v1141_v46, %v4356_v23 }
 0x4f0   : > { %v1184_v7 = vsel %vm1040_vm8, %v1171_v62, %v1183_v3  ;;  %v3346_v62 = vld [vmem:[#allocation14 + $0x60] ss:$12 sps:$4 sm:$0xff]  }
 0x4f1   : > { %v1144_v59 = vpop.permute.xlu1 %1143  ;;  %v3351_v3 = vld [vmem:[#allocation14 + $0x80] ss:$12 sps:$4 sm:$0xff]  }
 0x4f2   : > { %v1175_v1 = vrot.slane %v1144_v59, %v4356_v23  ;;  %v3343_v59 = vld [vmem:[#allocation14 + $0x50] ss:$12 sps:$4 sm:$0xff]  }
 0x4f3   : > { %3059 = vmatpush3.bf16.msra.mxu0 %v3343_v59 }
 0x4f4   : > { %v1185_v10 = vsel %vm1042_vm9, %v1175_v1, %v1184_v7  ;;  %3060 = vmatprep.subr.bf16.mxu0 %v3860_v27  ;;  %v3348_v1 = vld [vmem:[#allocation14 + $0x7c] ss:$12 sps:$4 sm:$0xff]  }
 0x4f5   : > { %v1147_v5 = vpop.permute.xlu1 %1146  ;;  %v3354_v7 = vld [vmem:[#allocation14 + $0x90] ss:$12 sps:$4 sm:$0xff]  }
 0x4f6   : > { %v1179_v9 = vrot.slane %v1147_v5, %v4356_v23  ;;  %v3352_v5 = vld [vmem:[#allocation14 + $0x94] ss:$12 sps:$4 sm:$0xff]  }
 0x4f7   : > { %3061 = vmatpush3.bf16.msra.mxu0 %v3347_v63 }
 0x4f8   : > { %v1186_v13 = vsel %vm1044_vm10, %v1179_v9, %v1185_v10  ;;  %3062 = vmatprep.subr.bf16.mxu0 %v3860_v27  ;;  %v3355_v9 = vld [vmem:[#allocation14 + $0x98] ss:$12 sps:$4 sm:$0xff]  }
 0x4f9   : > { %v1188_v14 = vsel %vm1047_vm11, %v1186_v13, 0.0  ;;  %v3356_v10 = vld [vmem:[#allocation14 + $0xac] ss:$12 sps:$4 sm:$0xff]   ;;  %v3358_v13 = vld [vmem:[#allocation14 + $0xa8] ss:$12 sps:$4 sm:$0xff]  }
 0x4fa   : > { %1189 = vadd.xlane.f32.xlu1 %v1188_v14  ;;  %v3359_v14 = vld [vmem:[#allocation14 + $0xb0] ss:$12 sps:$4 sm:$0xff]  }
 0x4fb   : > { %3063 = vmatpush3.bf16.msra.mxu0 %v3351_v3 }
 0x4fc   : > { %3064 = vmatprep.subr.bf16.mxu0 %v3860_v27 }
 0x4ff   : > { %3065 = vmatpush3.bf16.msra.mxu0 %v3355_v9 }
 0x500   : > { %3066 = vmatprep.subr.bf16.mxu0 %v3860_v27 }
 0x503   : > { %3067 = vmatpush3.bf16.msra.mxu0 %v3359_v14 }
 0x504   : > { %3072 = vmatprep.subr.bf16.mxu0 %v3860_v27 }
 0x587   : > { %v1190_v16 = vpop.xlane.xlu1 %1189 }
 0x588   : > { %v1195_v19 = vrot.slane %v1190_v16, %v4310_v47  ;;  %v1199_v20 = vrot.slane %v1190_v16, %v4378_v52  ;;  %v1203_v22 = vrot.slane %v1190_v16, %v4381_v54  ;;  %v1207_v23 = vrot.slane %v1190_v16, %v1066_v55 }
 0x589   : > { %v1211_v28 = vrot.slane %v1190_v16, %v1070_v61  ;;  %v1215_v32 = vrot.slane %v1190_v16, %v1074_v6  ;;  %v1219_v55 = vrot.slane %v1190_v16, %v1078_v11  ;;  %v1223_v61 = vrot.slane %v1190_v16, %v1082_v17  ;;  %v3332_v17 = vld [vmem:[#allocation14 + $0x1c] ss:$12 sps:$4 sm:$0xff]   ;;  %v3362_v16 = vld [vmem:[#allocation12 + $0x4] ss:$12 sps:$4 sm:$0xff]  }
 0x58a   : > { %3480 = vrcp.f32 %v1195_v19 }
 0x58b   : > { %3482 = vrcp.f32 %v1199_v20 }
 0x58c   : > { %3484 = vrcp.f32 %v1203_v22 }
 0x58d   : > { %3486 = vrcp.f32 %v1207_v23 }
 0x58e   : > { %3488 = vrcp.f32 %v1211_v28 }
 0x58f   : > { %3490 = vrcp.f32 %v1215_v32 }
 0x590   : > { %3492 = vrcp.f32 %v1219_v55 }
 0x591   : > { %3494 = vrcp.f32 %v1223_v61 }
 0x594   : > { %v3481_v26 = vpop.eup %3480 }
 0x595   : > { %v1233_v29 = vmul.f32 %v3481_v26, %v3465_v24  ;;  %v3483_v31 = vpop.eup %3482 }
 0x596   : > { %v1235_v34 = vmul.f32 %v3483_v31, %v4399_v25  ;;  %v3485_v40 = vpop.eup %3484 }
 0x597   : > { %1250 = vperm.xlu0 %3319, %v1233_v29   ;;  %v1237_v42 = vmul.f32 %v3485_v40, %v4404_v30  ;;  %v3487_v43 = vpop.eup %3486  ;;  %v3328_v30 = vld [vmem:[#allocation14 + $0x4] ss:$12 sps:$4 sm:$0xff]  }
 0x598   : > { %v1239_v24 = vmul.f32 %v3487_v43, %v4407_v33  ;;  %v3489_v44 = vpop.eup %3488  ;;  %1570 = vmatprep.subr.bf16.mxu1 %v3328_v30 }
 0x599   : > { %v1241_v6 = vmul.f32 %v3489_v44, %v4410_v35  ;;  %v3491_v25 = vpop.eup %3490  ;;  %1571 = vmatpush1.bf16.msra.mxu1 %v3330_v48  ;;  %v3334_v35 = vld [vmem:[#allocation14 + $0x18] ss:$12 sps:$4 sm:$0xff]  }
 0x59a   : > { %v1243_v45 = vmul.f32 %v3491_v25, %v4413_v37  ;;  %v3493_v11 = vpop.eup %3492  ;;  %1572 = vmatprep.subr.bf16.mxu1 %v3332_v17  ;;  %v3336_v37 = vld [vmem:[#allocation14 + $0x34] ss:$12 sps:$4 sm:$0xff]  }
 0x59b   : > { %1255 = vperm.xlu0 %3319, %v1235_v34   ;;  %v1245_v46 = vmul.f32 %v3493_v11, %v4416_v38  ;;  %v3495_v41 = vpop.eup %3494  ;;  %v3338_v38 = vld [vmem:[#allocation14 + $0x30] ss:$12 sps:$4 sm:$0xff]  }
 0x59c   : > { %v1247_v33 = vmul.f32 %v3495_v41, %v4419_v39  ;;  %v3342_v39 = vld [vmem:[#allocation14 + $0x48] ss:$12 sps:$4 sm:$0xff]  }
 0x59d   : > { %1573 = vmatpush1.bf16.msra.mxu1 %v3334_v35 }
 0x59e   : > { %1574 = vmatprep.subr.bf16.mxu1 %v3336_v37 }
 0x59f   : > { %1260 = vperm.xlu0 %3319, %v1237_v42  }
 0x5a1   : > { %1575 = vmatpush1.bf16.msra.mxu1 %v3338_v38 }
 0x5a2   : > { %1576 = vmatprep.subr.bf16.mxu1 %v3340_v57 }
 0x5a3   : > { %1265 = vperm.xlu0 %3319, %v1239_v24  }
 0x5a5   : > { %1577 = vmatpush1.bf16.msra.mxu1 %v3342_v39 }
 0x5a6   : > { %1578 = vmatprep.subr.bf16.mxu1 %v3344_v60 }
 0x5a7   : > { %1270 = vperm.xlu0 %3319, %v1241_v6  }
 0x5a9   : > { %1579 = vmatpush1.bf16.msra.mxu1 %v3346_v62 }
 0x5aa   : > { %1580 = vmatprep.subr.bf16.mxu1 %v3348_v1 }
 0x5ab   : > { %1275 = vperm.xlu0 %3319, %v1243_v45  }
 0x5ad   : > { %1581 = vmatpush1.bf16.msra.mxu1 %v3350_v2 }
 0x5ae   : > { %1582 = vmatprep.subr.bf16.mxu1 %v3352_v5 }
 0x5af   : > { %1280 = vperm.xlu0 %3319, %v1245_v46  }
 0x5b1   : > { %1583 = vmatpush1.bf16.msra.mxu1 %v3354_v7 }
 0x5b2   : > { %1584 = vmatprep.subr.bf16.mxu1 %v3356_v10 }
 0x5b3   : > { %1285 = vperm.xlu0 %3319, %v1247_v33  }
 0x5b5   : > { %1585 = vmatpush1.bf16.msra.mxu1 %v3358_v13 }
 0x5b6   : > { %1779 = vmatprep.subr.bf16.mxu1 %v3362_v16 }
 0x616   : > { %v1251_v19 = vpop.permute.xlu0 %1250 }
 0x617   : > { %v1288_v23 = vmul.f32 %v1251_v19, %v4313_v53 }
 0x619   : > { %v1296_v31 = vrot.slane %v1288_v23, 4 }
 0x61a   : > { %v1256_v20 = vpop.permute.xlu0 %1255 }
 0x61b   : > { %v1289_v22 = vmul.f32 %v1256_v20, %v4323_v0  ;;  %v1297_v42 = vadd.f32 %v1296_v31, %v1288_v23 }
 0x61d   : > { %v1302_v28 = vrot.slane %v1289_v22, 4  ;;  %v1298_v25 = vrot.slane %v1297_v42, 2 }
 0x61e   : > { %v1261_v26 = vpop.permute.xlu0 %1260 }
 0x61f   : > { %v1290_v29 = vmul.f32 %v1261_v26, %v4317_v58  ;;  %v1303_v40 = vadd.f32 %v1302_v28, %v1289_v22  ;;  %v1299_v48 = vadd.f32 %v1298_v25, %v1297_v42 }
 0x621   : > { %v1308_v32 = vrot.slane %v1290_v29, 4  ;;  %v1304_v44 = vrot.slane %v1303_v40, 2  ;;  %v1300_v56 = vrot.slane %v1299_v48, 1 }
 0x622   : > { %v1266_v34 = vpop.permute.xlu0 %1265 }
 0x623   : > { %v1291_v55 = vmul.f32 %v1266_v34, %v4328_v4  ;;  %v1309_v43 = vadd.f32 %v1308_v32, %v1290_v29  ;;  %v1305_v58 = vadd.f32 %v1304_v44, %v1303_v40  ;;  %v1301_v5 = vadd.f32 %v1300_v56, %v1299_v48  ;;  %v3370_v56 = vld [vmem:[#allocation12 + $0x34] ss:$12 sps:$4 sm:$0xff]  }
 0x625   : > { %v1314_v61 = vrot.slane %v1291_v55, 4  ;;  %v1310_v0 = vrot.slane %v1309_v43, 2  ;;  %v1306_v50 = vrot.slane %v1305_v58, 1  ;;  %v1377_v26 = vpack.c.bf16 %v1301_v5, %v1301_v5  ;;  %v3386_v5 = vld [vmem:[#allocation12 + $0x94] ss:$12 sps:$4 sm:$0xff]  }
 0x626   : > { %v1271_v24 = vpop.permute.xlu0 %1270 }
 0x627   : > { %v1315_v6 = vadd.f32 %v1314_v61, %v1291_v55  ;;  %v1292_v53 = vmul.f32 %v1271_v24, %v4333_v8  ;;  %v1311_v49 = vadd.f32 %v1310_v0, %v1309_v43  ;;  %v1425_v43 = vunpack.c.l.b16 %v1377_v26  ;;  %v3395_v26 = vld [vmem:[#allocation15 + $0x18] ss:$12 sps:$4 sm:$0xff]  }
 0x629   : > { %v1316_v45 = vrot.slane %v1315_v6, 2  ;;  %v1320_v11 = vrot.slane %v1292_v53, 4  ;;  %v1312_v57 = vrot.slane %v1311_v49, 1 }
 0x62a   : > { %v1276_v30 = vpop.permute.xlu0 %1275 }
 0x62b   : > { %v1293_v46 = vmul.f32 %v1276_v30, %v4338_v12  ;;  %v1321_v41 = vadd.f32 %v1320_v11, %v1292_v53  ;;  %v1317_v4 = vadd.f32 %v1316_v45, %v1315_v6  ;;  %v1307_v12 = vadd.f32 %v1306_v50, %v1305_v58  ;;  %v3366_v50 = vld [vmem:[#allocation12 + $0x1c] ss:$12 sps:$4 sm:$0xff]  }
 0x62c   : > { %v1313_v7 = vadd.f32 %v1312_v57, %v1311_v49  ;;  %v3368_v57 = vld [vmem:[#allocation12 + $0x30] ss:$12 sps:$4 sm:$0xff]  }
 0x62d   : > { %v1326_v17 = vrot.slane %v1293_v46, 4  ;;  %v1322_v33 = vrot.slane %v1321_v41, 2  ;;  %v1318_v39 = vrot.slane %v1317_v4, 1  ;;  %v1378_v16 = vpack.c.bf16 %v1307_v12, %v1307_v12  ;;  %v3379_v12 = vld [vmem:[#allocation12 + $0x68] ss:$12 sps:$4 sm:$0xff]  }
 0x62e   : > { %v1281_v35 = vpop.permute.xlu0 %1280  ;;  %v1379_v23 = vpack.c.bf16 %v1313_v7, %v1313_v7  ;;  %v3384_v7 = vld [vmem:[#allocation12 + $0x90] ss:$12 sps:$4 sm:$0xff]  }
 0x62f   : > { %v1327_v37 = vadd.f32 %v1326_v17, %v1293_v46  ;;  %v1294_v38 = vmul.f32 %v1281_v35, %v4343_v15  ;;  %v1323_v8 = vadd.f32 %v1322_v33, %v1321_v41  ;;  %v1319_v9 = vadd.f32 %v1318_v39, %v1317_v4  ;;  %v3360_v4 = vld [vmem:[#allocation12] ss:$12 sps:$4 sm:$0xff]   ;;  %v3363_v33 = vld [vmem:[#allocation12 + $0x8] ss:$12 sps:$4 sm:$0xff]  }
 0x630   : > { %v1426_v34 = vunpack.c.l.b16 %v1378_v16  ;;  %v1427_v42 = vunpack.c.l.b16 %v1379_v23  ;;  %v3374_v39 = vld [vmem:[#allocation12 + $0x4c] ss:$12 sps:$4 sm:$0xff]   ;;  %v3394_v16 = vld [vmem:[#allocation15 + $0x4] ss:$12 sps:$4 sm:$0xff]   ;;  %v3397_v23 = vld [vmem:[#allocation15 + $0x1c] ss:$12 sps:$4 sm:$0xff]  }
 0x631   : > { %v1328_v59 = vrot.slane %v1327_v37, 2  ;;  %v1332_v60 = vrot.slane %v1294_v38, 4  ;;  %v1324_v62 = vrot.slane %v1323_v8, 1  ;;  %v1380_v28 = vpack.c.bf16 %v1319_v9, %v1319_v9  ;;  %v3387_v9 = vld [vmem:[#allocation12 + $0x98] ss:$12 sps:$4 sm:$0xff]  }
 0x632   : > { %v1286_v63 = vpop.permute.xlu0 %1285  ;;  %v1433_v25 = vsel %vm1032_vm4, %v1426_v34, %v1425_v43  ;;  %v3403_v34 = vld [vmem:[#allocation15 + $0x4c] ss:$12 sps:$4 sm:$0xff]   ;;  %v3420_v43 = vld [vmem:[#allocation15 + $0x68] ss:$12 sps:$4 sm:$0xff]  }
 0x633   : > { %v1329_v1 = vadd.f32 %v1328_v59, %v1327_v37  ;;  %v1333_v2 = vadd.f32 %v1332_v60, %v1294_v38  ;;  %v1295_v3 = vmul.f32 %v1286_v63, %v4348_v18  ;;  %v1325_v15 = vadd.f32 %v1324_v62, %v1323_v8  ;;  %v3364_v37 = vld [vmem:[#allocation12 + $0x18] ss:$12 sps:$4 sm:$0xff]   ;;  %v3367_v38 = vld [vmem:[#allocation12 + $0x20] ss:$12 sps:$4 sm:$0xff]   ;;  %v3372_v59 = vld [vmem:[#allocation12 + $0x48] ss:$12 sps:$4 sm:$0xff]  }
 0x634   : > { %v1428_v61 = vunpack.c.l.b16 %v1380_v28  ;;  %v1434_v45 = vsel %vm1034_vm5, %v1427_v42, %v1433_v25  ;;  %v3371_v8 = vld [vmem:[#allocation12 + $0x38] ss:$12 sps:$4 sm:$0xff]   ;;  %v3375_v60 = vld [vmem:[#allocation12 + $0x50] ss:$12 sps:$4 sm:$0xff]   ;;  %v3376_v63 = vld [vmem:[#allocation12 + $0x60] ss:$12 sps:$4 sm:$0xff]  }
 0x635   : > { %v1330_v10 = vrot.slane %v1329_v1, 1  ;;  %v1334_v13 = vrot.slane %v1333_v2, 2  ;;  %v1338_v14 = vrot.slane %v1295_v3, 4  ;;  %v1381_v32 = vpack.c.bf16 %v1325_v15, %v1325_v15  ;;  %v3378_v62 = vld [vmem:[#allocation12 + $0x64] ss:$12 sps:$4 sm:$0xff]   ;;  %v762_v15 = vld [vmem:[#allocation3] sm:$0xff] }
 0x636   : > { %v1435_v30 = vsel %vm1036_vm6, %v1428_v61, %v1434_v45  ;;  %v3417_v28 = vld [vmem:[#allocation15 + $0x20] ss:$12 sps:$4 sm:$0xff]   ;;  %v3409_v61 = vld [vmem:[#allocation15 + $0x7c] ss:$12 sps:$4 sm:$0xff]   ;;  %vm2525_vm5 = vcmask 7168  }
 0x637   : > { %v1331_v19 = vadd.f32 %v1330_v10, %v1329_v1  ;;  %v1335_v20 = vadd.f32 %v1334_v13, %v1333_v2  ;;  %v1339_v22 = vadd.f32 %v1338_v14, %v1295_v3  ;;  %v1429_v6 = vunpack.c.l.b16 %v1381_v32  ;;  %v3382_v1 = vld [vmem:[#allocation12 + $0x7c] ss:$12 sps:$4 sm:$0xff]   ;;  %v3380_v2 = vld [vmem:[#allocation12 + $0x78] ss:$12 sps:$4 sm:$0xff]   ;;  %v3383_v3 = vld [vmem:[#allocation12 + $0x80] ss:$12 sps:$4 sm:$0xff]  }
 0x638   : > { %v3390_v10 = vld [vmem:[#allocation12 + $0xac] ss:$12 sps:$4 sm:$0xff]   ;;  %v3388_v13 = vld [vmem:[#allocation12 + $0xa8] ss:$12 sps:$4 sm:$0xff]   ;;  %v3391_v14 = vld [vmem:[#allocation12 + $0xb0] ss:$12 sps:$4 sm:$0xff]  }
 0x639   : > { %v1336_v29 = vrot.slane %v1335_v20, 1  ;;  %v1340_v31 = vrot.slane %v1339_v22, 2  ;;  %v1382_v40 = vpack.c.bf16 %v1331_v19, %v1331_v19  ;;  %v1436_v46 = vsel %vm1038_vm7, %v1429_v6, %v1435_v30  ;;  %v3418_v32 = vld [vmem:[#allocation15 + $0x38] ss:$12 sps:$4 sm:$0xff]   ;;  %v3404_v42 = vld [vmem:[#allocation15 + $0x60] ss:$12 sps:$4 sm:$0xff]  }
 0x63a   : > { %v1344_v19 = vpack.c.bf16 %v762_v15, %v762_v15  ;;  %v3412_v6 = vld [vmem:[#allocation15 + $0x94] ss:$12 sps:$4 sm:$0xff]   ;;  %v3410_v25 = vld [vmem:[#allocation15 + $0x90] ss:$12 sps:$4 sm:$0xff]   ;;  %v3426_v30 = vld [vmem:[#allocation17 + $0x4] ss:$8 sps:$4 sm:$0xff]  }
 0x63b   : > { %v1337_v18 = vadd.f32 %v1336_v29, %v1335_v20  ;;  %v1341_v55 = vadd.f32 %v1340_v31, %v1339_v22  ;;  %v1430_v0 = vunpack.c.l.b16 %v1382_v40  ;;  %v3392_v20 = vld [vmem:[#allocation15] ss:$12 sps:$4 sm:$0xff]   ;;  %v3413_v22 = vld [vmem:[#allocation15 + $0x8] ss:$12 sps:$4 sm:$0xff]   ;;  %v3398_v31 = vld [vmem:[#allocation15 + $0x30] ss:$12 sps:$4 sm:$0xff]  }
 0x63c   : > { %v3400_v29 = vld [vmem:[#allocation15 + $0x34] ss:$12 sps:$4 sm:$0xff]  }
 0x63d   : > { %v1383_v24 = vpack.c.bf16 %v1337_v18, %v1337_v18  ;;  %v1342_v44 = vrot.slane %v1341_v55, 1  ;;  %v1437_v49 = vsel %vm1040_vm8, %v1430_v0, %v1436_v46  ;;  %v3401_v40 = vld [vmem:[#allocation15 + $0x48] ss:$12 sps:$4 sm:$0xff]   ;;  %v3419_v18 = vld [vmem:[#allocation15 + $0x50] ss:$12 sps:$4 sm:$0xff]  }
 0x63e   : > { %v3422_v0 = vld [vmem:[#allocation15 + $0x98] ss:$12 sps:$4 sm:$0xff]   ;;  %v3414_v45 = vld [vmem:[#allocation15 + $0xa8] ss:$12 sps:$4 sm:$0xff]  }
 0x63f   : > { %v1343_v53 = vadd.f32 %v1342_v44, %v1341_v55  ;;  %v1431_v11 = vunpack.c.l.b16 %v1383_v24  ;;  %v3406_v55 = vld [vmem:[#allocation15 + $0x64] ss:$12 sps:$4 sm:$0xff]   ;;  %v3421_v44 = vld [vmem:[#allocation15 + $0x80] ss:$12 sps:$4 sm:$0xff]   ;;  %v3429_v46 = vld [vmem:[#allocation17 + $0x14] ss:$8 sps:$4 sm:$0xff]  }
 0x640   : > { %v3407_v24 = vld [vmem:[#allocation15 + $0x78] ss:$12 sps:$4 sm:$0xff]  }
 0x641   : > { %v1384_v58 = vpack.c.bf16 %v1343_v53, %v1343_v53  ;;  %v1438_v41 = vsel %vm1042_vm9, %v1431_v11, %v1437_v49  ;;  %v3416_v53 = vld [vmem:[#allocation15 + $0xac] ss:$12 sps:$4 sm:$0xff]   ;;  %v3423_v11 = vld [vmem:[#allocation15 + $0xb0] ss:$12 sps:$4 sm:$0xff]  }
 0x642   : > { %v3432_v49 = vld [vmem:[#allocation17 + $0x24] ss:$8 sps:$4 sm:$0xff]  }
 0x643   : > { %v1432_v48 = vunpack.c.l.b16 %v1384_v58  ;;  %v3424_v58 = vld [vmem:[#allocation17] ss:$8 sps:$4 sm:$0xff]  }
 0x645   : > { %v1439_v17 = vsel %vm1044_vm10, %v1432_v48, %v1438_v41  ;;  %v3427_v48 = vld [vmem:[#allocation17 + $0x10] ss:$8 sps:$4 sm:$0xff]   ;;  %v3430_v41 = vld [vmem:[#allocation17 + $0x20] ss:$8 sps:$4 sm:$0xff]  }
 0x646   : > { %v1440_v35 = vpack.c.b16 %v1439_v17, %v1439_v17  ;;  %v3433_v17 = vld [vmem:[#allocation17 + $0x30] ss:$8 sps:$4 sm:$0xff]  }
 0x648   : > { %1603 = vmatmul.mubr.bf16.vlgmr.msra.gmra.mrb[0].mxu1 %v1440_v35  ;;  %3069 = vmatmul.mubr.bf16.vlgmr.msra.gmra.mrb[4].mxu0 %v1440_v35  ;;  %v3439_v35 = vld [vmem:[#allocation17 + $0x50] ss:$8 sps:$4 sm:$0xff]  }
 0x649   : > { %1780 = vmatpush1.bf16.msra.mxu1 %v3360_v4  ;;  %3073 = vmatpush3.bf16.msra.mxu0 %v3363_v33  ;;  %v3435_v4 = vld [vmem:[#allocation17 + $0x34] ss:$8 sps:$4 sm:$0xff]   ;;  %v3438_v33 = vld [vmem:[#allocation17 + $0x44] ss:$8 sps:$4 sm:$0xff]  }
 0x64a   : > { %1781 = vmatprep.subr.bf16.mxu1 %v3366_v50  ;;  %3074 = vmatprep.subr.bf16.mxu0 %v3860_v27  ;;  %v3444_v50 = vld [vmem:[#allocation17 + $0x64] ss:$8 sps:$4 sm:$0xff]  }
 0x64b   : > { %3088 = vmatprep.mubr.msk.bf16.mxu0 %vm3861_vm3, %v3860_v27  ;;  %1811 = vmatprep.mubr.bf16.mxu1 %v3863_v51 }
 0x64d   : > { %1782 = vmatpush1.bf16.msra.mxu1 %v3364_v37  ;;  %3075 = vmatpush3.bf16.msra.mxu0 %v3367_v38  ;;  %v3442_v37 = vld [vmem:[#allocation17 + $0x60] ss:$8 sps:$4 sm:$0xff]   ;;  %v3447_v38 = vld [vmem:[#allocation17 + $0x74] ss:$8 sps:$4 sm:$0xff]  }
 0x64e   : > { %1783 = vmatprep.subr.bf16.mxu1 %v3370_v56  ;;  %3076 = vmatprep.subr.bf16.mxu0 %v3860_v27  ;;  %v3445_v56 = vld [vmem:[#allocation17 + $0x70] ss:$8 sps:$4 sm:$0xff]  }
 0x651   : > { %1784 = vmatpush1.bf16.msra.mxu1 %v3368_v57  ;;  %3077 = vmatpush3.bf16.msra.mxu0 %v3371_v8 }
 0x652   : > { %1785 = vmatprep.subr.bf16.mxu1 %v3374_v39  ;;  %3078 = vmatprep.subr.bf16.mxu0 %v3860_v27 }
 0x655   : > { %1786 = vmatpush1.bf16.msra.mxu1 %v3372_v59  ;;  %3079 = vmatpush3.bf16.msra.mxu0 %v3375_v60 }
 0x656   : > { %1787 = vmatprep.subr.bf16.mxu1 %v3378_v62  ;;  %3080 = vmatprep.subr.bf16.mxu0 %v3860_v27 }
 0x659   : > { %1788 = vmatpush1.bf16.msra.mxu1 %v3376_v63  ;;  %3081 = vmatpush3.bf16.msra.mxu0 %v3379_v12 }
 0x65a   : > { %1789 = vmatprep.subr.bf16.mxu1 %v3382_v1  ;;  %3082 = vmatprep.subr.bf16.mxu0 %v3860_v27 }
 0x65d   : > { %1790 = vmatpush1.bf16.msra.mxu1 %v3380_v2  ;;  %3083 = vmatpush3.bf16.msra.mxu0 %v3383_v3  ;;  %v1912_v2 = vld [vmem:[%s4693_s7] sm:$0x7] }
 0x65e   : > { %1791 = vmatprep.subr.bf16.mxu1 %v3386_v5  ;;  %3084 = vmatprep.subr.bf16.mxu0 %v3860_v27  ;;  %v1860_v3 = vld [vmem:[%s4694_s27] sm:$0x7] }
 0x65f   : > { %v1865_v5 = vrot.slane %v1860_v3, %v4310_v47 }
 0x661   : > { %1792 = vmatpush1.bf16.msra.mxu1 %v3384_v7  ;;  %3085 = vmatpush3.bf16.msra.mxu0 %v3387_v9  ;;  %v1917_v7 = vrot.slane %v1912_v2, %v4310_v47  ;;  %v1869_v9 = vrot.slane %v1860_v3, %v4378_v52 }
 0x662   : > { %1793 = vmatprep.subr.bf16.mxu1 %v3390_v10  ;;  %3086 = vmatprep.subr.bf16.mxu0 %v3860_v27  ;;  %v1921_v10 = vrot.slane %v1912_v2, %v4378_v52 }
 0x664   : > { %v3114_v15 = vadd.f32 %v1921_v10, %v1869_v9  ;;  %v3458_v9 = vld [vmem:[#allocation9 + $0x68] sm:$0xff]  }
 0x665   : > { %1794 = vmatpush1.bf16.msra.mxu1 %v3388_v13  ;;  %3087 = vmatpush3.bf16.msra.mxu0 %v3391_v14  ;;  %v3112_v13 = vadd.f32 %v1917_v7, %v1865_v5  ;;  %v3456_v5 = vld [vmem:[#allocation9 + $0x60] sm:$0xff]   ;;  %v3459_v10 = vld [vmem:[#allocation9 + $0x28] sm:$0xff]  }
 0x666   : > { %2057 = vmatprep.subr.bf16.mxu1 %v3394_v16  ;;  %3092 = vmatprep.subr.bf16.mxu0 %v3860_v27  ;;  %v3457_v7 = vld [vmem:[#allocation9 + $0x20] sm:$0xff]  }
 0x668   : > { %3089 = vmatmul.mubr.bf16.vlgmr.msra.gmra.mrb[8].mxu0 %v1344_v19  ;;  %1812 = vmatmul.mubr.bf16.vlgmr.msra.gmra.mrb[0].mxu1 %v1344_v19 }
 0x669   : > { %2058 = vmatpush1.bf16.msra.mxu1 %v3392_v20  ;;  %3093 = vmatpush3.bf16.msra.mxu0 %v3413_v22 }
 0x66a   : > { %2059 = vmatprep.subr.bf16.mxu1 %v3397_v23  ;;  %3094 = vmatprep.subr.bf16.mxu0 %v3860_v27 }
 0x66b   : > { %2089 = vmatprep.mubr.bf16.mxu1 %v3863_v51  ;;  %3108 = vmatprep.mubr.msk.bf16.mxu0 %vm3861_vm3, %v3860_v27 }
 0x66d   : > { %2060 = vmatpush1.bf16.msra.mxu1 %v3395_v26  ;;  %3095 = vmatpush3.bf16.msra.mxu0 %v3417_v28 }
 0x66e   : > { %2061 = vmatprep.subr.bf16.mxu1 %v3400_v29  ;;  %3096 = vmatprep.subr.bf16.mxu0 %v3860_v27 }
 0x671   : > { %2062 = vmatpush1.bf16.msra.mxu1 %v3398_v31  ;;  %3097 = vmatpush3.bf16.msra.mxu0 %v3418_v32 }
 0x672   : > { %2063 = vmatprep.subr.bf16.mxu1 %v3403_v34  ;;  %3098 = vmatprep.subr.bf16.mxu0 %v3860_v27 }
 0x675   : > { %2064 = vmatpush1.bf16.msra.mxu1 %v3401_v40  ;;  %3099 = vmatpush3.bf16.msra.mxu0 %v3419_v18 }
 0x676   : > { %2065 = vmatprep.subr.bf16.mxu1 %v3406_v55  ;;  %3100 = vmatprep.subr.bf16.mxu0 %v3860_v27  ;;  %v1925_v55 = vrot.slane %v1912_v2, %v4381_v54  ;;  %v3454_v2 = vld [vmem:[#allocation9 + $0x58] sm:$0xff]  }
 0x679   : > { %2066 = vmatpush1.bf16.msra.mxu1 %v3404_v42  ;;  %3101 = vmatpush3.bf16.msra.mxu0 %v3420_v43  ;;  %v1873_v43 = vrot.slane %v1860_v3, %v4381_v54  ;;  %v3455_v3 = vld [vmem:[#allocation9 + $0x18] sm:$0xff]  }
 0x67a   : > { %2067 = vmatprep.subr.bf16.mxu1 %v3409_v61  ;;  %3102 = vmatprep.subr.bf16.mxu0 %v3860_v27 }
 0x67d   : > { %2068 = vmatpush1.bf16.msra.mxu1 %v3407_v24  ;;  %3103 = vmatpush3.bf16.msra.mxu0 %v3421_v44 }
 0x67e   : > { %2069 = vmatprep.subr.bf16.mxu1 %v3412_v6  ;;  %3104 = vmatprep.subr.bf16.mxu0 %v3860_v27 }
 0x681   : > { %2070 = vmatpush1.bf16.msra.mxu1 %v3410_v25  ;;  %3105 = vmatpush3.bf16.msra.mxu0 %v3422_v0 }
 0x682   : > { %2071 = vmatprep.subr.bf16.mxu1 %v3416_v53  ;;  %3106 = vmatprep.subr.bf16.mxu0 %v3860_v27 }
 0x685   : > { %2072 = vmatpush1.bf16.msra.mxu1 %v3414_v45  ;;  %3107 = vmatpush3.bf16.msra.mxu0 %v3423_v11 }
 0x686   : > { %2268 = vmatprep.subr.bf16.mxu1 %v3426_v30  ;;  %v3506_v30 = vld [vmem:[#allocation2] sm:$0xff] }
 0x688   : > { %2090 = vmatmul.mubr.bf16.vlgmr.msra.gmra.mrb[0].mxu1 %v4300_v36  ;;  %3109 = vmatmul.mubr.bf16.vlgmr.msra.gmra.mrb[12].mxu0 %v4300_v36  ;;  %v3436_v36 = vld [vmem:[#allocation17 + $0x40] ss:$8 sps:$4 sm:$0xff]  }
 0x689   : > { %2300 = vmatprep.mubr.bf16.mxu1 %v3863_v51  ;;  %2269 = vmatpush1.bf16.msra.mxu1 %v3424_v58  ;;  %v3441_v51 = vld [vmem:[#allocation17 + $0x54] ss:$8 sps:$4 sm:$0xff]  }
 0x68a   : > { %2270 = vmatprep.subr.bf16.mxu1 %v3429_v46 }
 0x68d   : > { %2271 = vmatpush1.bf16.msra.mxu1 %v3427_v48 }
 0x68e   : > { %2272 = vmatprep.subr.bf16.mxu1 %v3432_v49  ;;  %v2176_v49 = vld [vmem:[%s4695_s0] sm:$0x3] }
 0x691   : > { %2273 = vmatpush1.bf16.msra.mxu1 %v3430_v41  ;;  %v2181_v41 = vrot.slane %v2176_v49, %v4310_v47 }
 0x692   : > { %2274 = vmatprep.subr.bf16.mxu1 %v3435_v4  ;;  %v2185_v4 = vrot.slane %v2176_v49, %v4378_v52 }
 0x695   : > { %2275 = vmatpush1.bf16.msra.mxu1 %v3433_v17 }
 0x696   : > { %2276 = vmatprep.subr.bf16.mxu1 %v3438_v33 }
 0x699   : > { %2277 = vmatpush1.bf16.msra.mxu1 %v3436_v36 }
 0x69a   : > { %2278 = vmatprep.subr.bf16.mxu1 %v3441_v51 }
 0x69d   : > { %2279 = vmatpush1.bf16.msra.mxu1 %v3439_v35 }
 0x69e   : > { %2280 = vmatprep.subr.bf16.mxu1 %v3444_v50 }
 0x6a1   : > { %2281 = vmatpush1.bf16.msra.mxu1 %v3442_v37 }
 0x6a2   : > { %2282 = vmatprep.subr.bf16.mxu1 %v3447_v38  ;;  %v4532_v38 = vadd.s32 128, %v4352_v21 }
 0x6a5   : > { %2283 = vmatpush1.bf16.msra.mxu1 %v3445_v56 }
 0x71b   : > { %v1645_v57 = vpop.f32.mrb[4].mxu0 }
 0x71c   : > { %v3070_v8 = vpop.f32.mrb[5].mxu0 }
 0x71d   : > { %v1648_v39 = vpop.f32.mrb[6].mxu0 }
 0x71e   : > { %v3071_v59 = vpop.f32.mrb[7].mxu0 }
 0x71f   : > { %v3448_v59 = vld [vmem:[#allocation9 + $0x40] sm:$0xff]  }
 0x720   : > { %3010 = vmatprep.subr.bf16.mxu0 %v3448_v59 }
 0x73b   : > { %v1854_v60 = vpop.f32.mrb[8].mxu0 }
 0x73c   : > { %v1855_v62 = vadd.f32 %v1854_v60, %v1645_v57  ;;  %v3090_v63 = vpop.f32.mrb[9].mxu0  ;;  %v3449_v60 = vld [vmem:[#allocation9] sm:$0xff]  }
 0x73d   : > { %v1857_v12 = vpop.f32.mrb[10].mxu0  ;;  %3011 = vmatpush3.bf16.msra.mxu0 %v3449_v60  ;;  %v3451_v63 = vld [vmem:[#allocation9 + $0x8] sm:$0xff]  }
 0x73e   : > { %v3091_v1 = vpop.f32.mrb[11].mxu0  ;;  %v1879_v6 = vadd.f32 %v1873_v43, %v1855_v62  ;;  %v3450_v62 = vld [vmem:[#allocation9 + $0x48] sm:$0xff]   ;;  %v3452_v12 = vld [vmem:[#allocation9 + $0x50] sm:$0xff]   ;;  %v3864_v43 = vmov 1.0|1.0  }
 0x73f   : > { %3012 = vmatprep.subr.bf16.mxu0 %v3450_v62  ;;  %v3453_v1 = vld [vmem:[#allocation9 + $0x10] sm:$0xff]  }
 0x741   : > { %3013 = vmatpush3.bf16.msra.mxu0 %v3451_v63 }
 0x742   : > { %3014 = vmatprep.subr.bf16.mxu0 %v3452_v12 }
 0x745   : > { %3015 = vmatpush3.bf16.msra.mxu0 %v3453_v1 }
 0x746   : > { %3016 = vmatprep.subr.bf16.mxu0 %v3454_v2 }
 0x749   : > { %3017 = vmatpush3.bf16.msra.mxu0 %v3455_v3 }
 0x74a   : > { %3018 = vmatprep.subr.bf16.mxu0 %v3456_v5 }
 0x74d   : > { %3019 = vmatpush3.bf16.msra.mxu0 %v3457_v7 }
 0x74e   : > { %3020 = vmatprep.subr.bf16.mxu0 %v3458_v9 }
 0x751   : > { %3021 = vmatpush3.bf16.msra.mxu0 %v3459_v10 }
 0x75b   : > { %v2091_v14 = vpop.f32.mrb[0].mxu1  ;;  %v2132_v16 = vpop.f32.mrb[12].mxu0 }
 0x75c   : > { %v3113_v19 = vadd.f32 %v3112_v13, %v2091_v14  ;;  %v2093_v20 = vpop.f32.mrb[1].mxu1  ;;  %v3110_v22 = vpop.f32.mrb[13].mxu0  ;;  %v2133_v24 = vadd.f32 %v2132_v16, %v1925_v55  ;;  %v3460_v13 = vld [vmem:[#allocation9 + $0x70] sm:$0xff]  }
 0x75d   : > { %v2095_v23 = vpop.f32.mrb[2].mxu1  ;;  %v2135_v26 = vpop.f32.mrb[14].mxu0  ;;  %v3115_v32 = vadd.f32 %v3114_v15, %v2093_v20  ;;  %3022 = vmatprep.subr.bf16.mxu0 %v3460_v13  ;;  %v3461_v20 = vld [vmem:[#allocation9 + $0x30] sm:$0xff]   ;;  %v3462_v22 = vld [vmem:[#allocation9 + $0x78] sm:$0xff]  }
 0x75e   : > { %v2903_v28 = vmul.f32 -1.442695, %v3113_v19  ;;  %v2096_v29 = vpop.f32.mrb[3].mxu1  ;;  %v3111_v31 = vpop.f32.mrb[15].mxu0  ;;  %3023 = vmatpush3.bf16.msra.mxu0 %v3461_v20  ;;  %v3463_v23 = vld [vmem:[#allocation9 + $0x38] sm:$0xff]  }
 0x75f   : > { %v2904_v34 = vmul.f32 -1.442695, %v3115_v32  ;;  %3024 = vmatprep.subr.bf16.mxu0 %v3462_v22 }
 0x760   : > { %3496 = vpow2.f32 %v2903_v28 }
 0x761   : > { %3498 = vpow2.f32 %v2904_v34  ;;  %v2523_v34 = vld [vmem:[#allocation5] sm:$0xff] }
 0x762   : > { %3025 = vmatpush3.bf16.msra.mxu0 %v3463_v23 }
 0x76a   : > { %v3497_v40 = vpop.eup %3496 }
 0x76b   : > { %v2142_v18 = vadd.f32 1.0, %v3497_v40  ;;  %v3499_v42 = vpop.eup %3498  ;;  %v2519_v40 = vld [vmem:[#allocation4] sm:$0xff] }
 0x76c   : > { %v2149_v61 = vadd.f32 1.0, %v3499_v42 }
 0x76d   : > { %3500 = vrcp.f32 %v2142_v18 }
 0x76e   : > { %3502 = vrcp.f32 %v2149_v61 }
 0x777   : > { %v3501_v44 = vpop.eup %3500 }
 0x778   : > { %v2152_v25 = vmul.f32 %v3501_v44, %v2133_v24  ;;  %v3503_v53 = vpop.eup %3502 }
 0x779   : > { %v2155_v45 = vsub.f32 1.0, %v3503_v53  ;;  %v2157_v58 = vmul.f32 %v3506_v30, %v3503_v53 }
 0x77a   : > { %v2153_v0 = vadd.f32 %v2152_v25, %v1879_v6 }
 0x77c   : > { %3504 = vtanh.f32 %v2153_v0 }
 0x786   : > { %v3505_v11 = vpop.eup %3504 }
 0x787   : > { %v2156_v46 = vmul.f32 %v3505_v11, %v2155_v45 }
 0x789   : > { %v4517_v48 = vadd.f32 %v2157_v58, %v2156_v46 }
 0x78b   : > { %v2159_v54 = vpack.c.bf16 %v4517_v48, %v4517_v48  ;;  %2311 = vst [vmem:[%s4281_s8] sm:$0xff] %v4517_v48  ;;  %2312 = vst [vmem:[#allocation2] sm:$0xff] %v4517_v48 }
 0x78d   : > { %2301 = vmatmul.mubr.bf16.vlgmr.msra.gmra.mrb[4].mxu1 %v2159_v54 }
 0x860   : > { %v2302_v17 = vpop.f32.mrb[4].mxu1 }
 0x861   : > { %v2303_v33 = vadd.f32 %v2302_v17, %v2181_v41  ;;  %v2304_v36 = vpop.f32.mrb[5].mxu1 }
 0x862   : > { %v2305_v51 = vadd.f32 %v2304_v36, %v2185_v4  ;;  %v2306_v35 = vpop.f32.mrb[6].mxu1 }
 0x863   : > { %2309 = vst [vmem:[%s4283_s1] sm:$0xff] %v2303_v33  ;;  %v2307_v50 = vpop.f32.mrb[7].mxu1 }
 0x864   : > { %2310 = vst [vmem:[%s4283_s1 + $0x8] sm:$0xff] %v2305_v51  ;;  %v2314_v37 = vmax.f32 %v2303_v33, %v2305_v51 }
 0x866   : > { %2315 = vmax.xlane.f32.xlu1 %v2314_v37 }
 0x8f3   : > { %v2316_v56 = vpop.xlane.xlu1 %2315 }
 0x8f4   : > { %vm2317_vm12 = vcmp.eq.f32.partialorder %v2303_v33, %v2316_v56  ;;  %vm2318_vm13 = vcmp.eq.f32.partialorder %v2305_v51, %v2316_v56 }
 0x8f5   : > { %v2319_v47 = vsel %vm2317_vm12, %v4352_v21, 256  ;;  %v2320_v52 = vsel %vm2318_vm13, %v4532_v38, 256 }
 0x8f6   : > { %vm2321_vm14 = vcmp.lt.s32.totalorder %v2319_v47, %v2320_v52 }
 0x8f7   : > { %v2322_v57 = vsel %vm2321_vm14, %v2319_v47, %v2320_v52 }
 0x8f8   : > { %v2324_v8 = vshra.s32 %v2322_v57, 16  ;;  %v2323_v14 = vand.u32 65535, %v2322_v57 }
 0x8fa   : > { %v2326_v39 = vcvt.s32.f32 %v2324_v8  ;;  %v2325_v16 = vcvt.s32.f32 %v2323_v14 }
 0x8fc   : > { %2327 = vmin.xlane.f32.xlu0 %v2326_v39 }
 0x989   : > { %v2328_v15 = vpop.xlane.xlu0 %2327 }
 0x98a   : > { %vm2329_vm15 = vcmp.eq.f32.partialorder %v2326_v39, %v2328_v15  ;;  %v2334_v26 = vcvt.f32.s32 %v2328_v15 }
 0x98b   : > { %v2330_v19 = vsel %vm2329_vm15, %v2325_v16, inf }
 0x98c   : > { %2331 = vmin.xlane.f32.xlu1 %v2330_v19  ;;  %v2335_v29 = vshll.u32 %v2334_v26, 16 }
 0xa19   : > { %v2332_v28 = vpop.xlane.xlu1 %2331 }
 0xa1a   : > { %v2333_v31 = vcvt.f32.s32 %v2332_v28 }
 0xa1c   : > { %v2336_v32 = vadd.s32 %v2335_v29, %v2333_v31 }
 0xa1e   : > { %vm2514_vm0 = vcmp.ne.s32.totalorder %v2336_v32, 0  ;;  %vm2515_vm1 = vcmp.ne.s32.totalorder %v2336_v32, 2  ;;  %vm2338_vm2 = vcmp.eq.s32.totalorder %v4532_v38, %v2336_v32  ;;  %vm2337_vm3 = vcmp.eq.s32.totalorder %v4352_v21, %v2336_v32 }
 0xa1f   : > { %vm2516_vm4 = vmand %vm2514_vm0, %vm2515_vm1 }
 0xa20   : > { %v2943_v18 = vsel %vm2516_vm4, 1.0, %v3860_v27  ;;  %vm2939_vm6 = vmpackc.low %vm2338_vm2, %vm2338_vm2 }
 0xa21   : > { %v2520_v55 = vmul.f32 %v2943_v18, %v4517_v48  ;;  %v2524_v42 = vadd.f32 %v2943_v18, %v2523_v34  ;;  %2940 = vmatprep.mubr.msk.bf16.mxu0 %vm2939_vm6, %v3864_v43  ;;  %vm2941_vm7 = vmpackc.low %vm2337_vm3, %vm2337_vm3 }
 0xa22   : > { %2942 = vmatmul.mubr.msk.bf16.vlgmr.msra.gmra.mrb[16].mxu0 %vm2941_vm7, %v3864_v43 }
 0xa23   : > { %v2521_v61 = vadd.f32 %v2520_v55, %v2519_v40  ;;  %2526 = vst.msk [vmem:[#allocation5] sm:$0xff] %vm2525_vm5, %v2524_v42 }
 0xa25   : > { %2522 = vst [vmem:[#allocation4] sm:$0xff] %v2521_v61 }
 0xaf5   : > { %v3026_v24 = vpop.f32.mrb[16].mxu0 }
 0xaf6   : > { %v3027_v44 = vpop.f32.mrb[17].mxu0 }
 0xaf7   : > { %v3028_v6 = vadd.f32 %v3027_v44, %v3026_v24  ;;  %v3029_v21 = vpop.f32.mrb[18].mxu0 }
 0xaf8   : > { %v3030_v25 = vpop.f32.mrb[19].mxu0 }
 0xaf9   : > { %2513 = vst [vmem:[#allocation3] sm:$0xff] %v3028_v6 }
 0xafa PF: > { %s4696_s8 = sld [smem:[#allocation26_spill]] }
 0xb00   : > { %p2944_p3 = scmp.ne.s32.totalorder %s4696_s8, 7 }
 0xb01   : > { %v2532_v27 = vld [vmem:[#allocation5] sm:$0xff] (!%p2944_p3)  ;;  %v3865_v0 = vmov (!%p2944_p3), 0   ;;  %v2531_v45 = vld [vmem:[#allocation4] sm:$0xff] (!%p2944_p3) }
 0xb02   : > { %2530 = sbr.rel (%p2944_p3) target bundleno = 2961 (0xb91), region = 100  ;;  %3507 = vset.pattern.permute.xlu0 (!%p2944_p3), %v3865_v0 }
 0xb03   : > { %2535 = vperm.xlu0 (!%p2944_p3), %3507, %v2532_v27  }
 0xb82   : > { %v2536_v53 = vpop.permute.xlu0 %2535 }
 0xb83   : > { %3508 = vrcp.f32 %v2536_v53 }
 0xb8d   : > { %v3509_v11 = vpop.eup %3508 }
 0xb8e   : > { %v2539_v30 = vmul.f32 %v3509_v11, %v2531_v45 }
 0xb90   : > { %2540 = vst [vmem:[%s4276_s3] sm:$0xff] %v2539_v30 }
 0xb91 PF: > { %s4697_s14 = sld [smem:[#allocation27_spill]]  ;;  %s4698_s21 = sld [smem:[#allocation26_spill]] }
 0xb92   : > { %s2570_s15 = sshll.u32 %s4283_s1, 4  ;;  %s4700_s9 = sld [smem:[#allocation41_spill]]  ;;  %s4545_s15 = int_to_ptr.vmem [resolvable:$true] %s2570_s15 }
 0xb93   : > { %s2542_s18 = scalar_lea.sflag [#allocation8], %s533_s16  ;;  %s3708_s27 = scalar_lea.vmem %s4545_s15, 256 }
 0xb94   : > { %p3709_p5 = scmp.ne.s32.totalorder %s4545_s15, %s3708_s27  ;;  %p4701_p2 = scmp.ne.s32.totalorder %s4678_s28, 0 }
 0xb95   : > { %s3866_s20 = smov [#allocation18]  }
 0xb96   : > { %p3710_p7 = pnand %p3709_p5, %p4701_p2  ;;  %s3712_s1 = sshll.u32 %s3866_s20, 4  ;;  %s3713_s1 = int_to_ptr.vmem [resolvable:$false] %s3712_s1 }
 0xb97   : > { %s2946_s11 = sshll.u32 %s4697_s14, 1  ;;  %s2947_s12 = sshll.u32 %s4698_s21, 2 }
 0xb98   : > { %s2566_s2 = sadd.s32 %s2947_s12, %s2946_s11  ;;  %p3711_p11 = pneg %p3710_p7 }
 0xb99   : > { %s2948_s4 = sshll.u32 %s2566_s2, 7  ;;  %s3714_s24 = scalar_lea.vmem %s3713_s1, 512 }
 0xb9a   : > { %s2568_s3 = scalar_lea.hbm %s4700_s9, %s2948_s4  ;;  %p3715_p4 = scmp.lt.s32.totalorder %s4545_s15, %s3713_s1 }
 0xb9b   : > { %p3716_p13 = scmp.lt.s32.totalorder %s3714_s24, %s3708_s27 }
 0xb9d   : > { %p3717_p0 = por %p3716_p13, %p3715_p4 }
 0xb9f   : > { %p3718_p9 = pnand %p3717_p0, %p3711_p11 }
 0xba1   : > { %3721 = shalt.err (!%p3718_p9)
}
 0xba2   : > { %s3722_s0 = scalar_lea.hbm %s2568_s3, 256  ;;  %s3726_s14 = scalar_lea.hbm %s4700_s9, 4096 }
 0xba3   : > { %p3723_p8 = scmp.ne.s32.totalorder %s2568_s3, %s3722_s0  ;;  %p3727_p6 = scmp.lt.u32.totalorder %s2568_s3, %s4700_s9 }
 0xba4   : > { %p3728_p12 = scmp.lt.u32.totalorder %s3726_s14, %s3722_s0  ;;  %p3730_p5 = scmp.lt.u32.totalorder %s3722_s0, %s2568_s3 }
 0xba5   : > { %p3724_p10 = pnand %p3723_p8, %p4701_p2 }
 0xba6   : > { %p3729_p3 = por %p3728_p12, %p3727_p6 }
 0xba7   : > { %p3725_p1 = pneg %p3724_p10 }
 0xba8   : > { %p3731_p7 = por %p3730_p5, %p3729_p3 }
 0xbaa   : > { %p3732_p11 = pnand %p3731_p7, %p3725_p1 }
 0xbac   : > { %3735 = shalt.err (!%p3732_p11)
}
 0xbad   : > { %3150 = dma.vmem_to_hbm [thread:$0]  (%p4701_p2), %s4545_s15, 256, %s2568_s3, %s2542_s18  }
 0xbae PF: > { %s4702_s11 = sld [smem:[#allocation24_spill]]  ;;  %p3192_p4 = scmp.ge.s32.totalorder %s3842_s13, 2 }
 0xbaf   : > { %p4703_p13 = scmp.ne.s32.totalorder %s4679_s10, 0 }
 0xbb1   : > { %p3176_p0 = pnand %p3192_p4, %p4703_p13 }
 0xbb4   : > { %s2588_s12 = sand.u32 1, %s4702_s11  }
 0xbb5   : > { %s2589_s2 = scalar_lea.sflag [#allocation8], %s2588_s12 }
 0xbb6   : > { %3797 = dma.done.wait (!%p3176_p0), %s2589_s2, 256  }
 0xbb7   : > { %3799 = vsyncadd (!%p3176_p0), %s2589_s2, 4294967040  ;;  %s32_s13 = sadd.s32 1, %s3842_s13   ;;  %s4704_s21 = sld [smem:[#allocation25_spill]] }
 0xbb8   : > { %p29_p9 = scmp.ge.s32.totalorder %s32_s13, 18   ;;  %s4705_s4 = smov %s4192_s22 }
 0xbb9   : > { %s4706_s15 = sld [smem:[#allocation30_spill]]  ;;  %s4707_s22 = smov %s3810_s23 }
 0xbba   : > { %s4708_s23 = smov %s4705_s4  ;;  %s4709_s24 = smov %s3818_s25 }
 0xbbb   : > { %s4710_s25 = smov %s3822_s26  ;;  %s4711_s26 = smov %s4189_s6 }
 0xbbc   : > { %s4712_s27 = smov %s3834_s29  ;;  %s4713_s28 = smov %s3838_s30 }
 0xbbd   : > { %s4714_s29 = smov %s4717_s17  ;;  %31 = sbr.rel (!%p29_p9) target bundleno = 26 (0x1a), region = 165 }
 0xbbf   : > { %s4715_s30 = smov %s4706_s15 }
 0xbc4   :  { %2612 = vsyncpa [#allocation7], 1 }
 0xbc5   :  { %2614 = vsyncpa [#allocation7 + $0x1], 1 }
 0xbc6   :  { %2615 = vsyncpa [#allocation10], 1 }
 0xbc7   :  { %2616 = vsyncpa [#allocation13], 1 }
 0xbc8   :  { %2617 = vsyncpa [#allocation16], 1 }
 0xbc9   :  { %2618 = vsyncpa [#allocation8], 1 }
 0xbca   :  { %2620 = vsyncpa [#allocation8 + $0x1], 1 }

</bundles_post_ra>
